<compile_context>
chip_gen: v7x
topology: tpu7x:2x2x1
jax: 0.10.0
libtpu: 0.0.40
codegen_flags: <defaults>
</compile_context>

<pallas_src>
import functools

import jax
import jax.numpy as jnp
from jax.experimental import pallas as pl
from jax.experimental.pallas import tpu as pltpu

_EPS = 1e-5
_LANE = 128
_VMEM_LIMIT = 32 * 1024 * 1024  # explicit scoped-VMEM budget (safe on v5e/v6e/v7x)


def _round_up(x, m):
    return (x + m - 1) // m * m


# ----------------------------- Pallas kernels ------------------------------

def _conv_taps_kernel(x_ref, w_ref, y_ref, *stats_refs, taps, out_hw, relu):
    """(optional ReLU) -> conv as a sum of per-tap matmuls (+ BN statistics).

    x_ref : (1, S*S, Hq, Wq, Cin)  phase-decomposed, zero-padded input image.
    w_ref : (T, Cin, CP)           bf16 weights, one (Cin, CP) slab per tap.
    y_ref : (Ho*Wo, CP)            f32 pre-BN conv rows for this image.
    stats : sum_ref, sumsq_ref     (1, CP) each, accumulated across the grid.
    """
    ho, wo = out_hw
    m = ho * wo
    cin = x_ref.shape[-1]
    cp = y_ref.shape[-1]

    acc = jnp.zeros((m, cp), jnp.float32)
    for t, (p, dh, dw) in enumerate(taps):
        xt = x_ref[0, p, dh:dh + ho, dw:dw + wo, :]       # (Ho, Wo, Cin) view
        if relu:
            xt = jnp.maximum(xt, 0.0)
        # reshape while still f32 (8-sublane tiling), then cast for the MXU
        xt = xt.reshape(m, cin).astype(jnp.bfloat16)
        acc = acc + jnp.dot(xt, w_ref[t], preferred_element_type=jnp.float32)
    y_ref[...] = acc

    if stats_refs:
        s_ref, ss_ref = stats_refs

        @pl.when(pl.program_id(0) == 0)
        def _init():
            s_ref[...] = jnp.zeros_like(s_ref)
            ss_ref[...] = jnp.zeros_like(ss_ref)

        s_ref[...] += jnp.sum(acc, axis=0, keepdims=True)
        ss_ref[...] += jnp.sum(acc * acc, axis=0, keepdims=True)


def _bn_finalize_kernel(y_ref, s_ref, ss_ref, g_ref, b_ref, *rest, count):
    """One-pass-stats BN: out = y * scale + bias (+ residual)."""
    o_ref = rest[-1]
    inv = 1.0 / count
    mean = s_ref[...] * inv
    var = ss_ref[...] * inv - mean * mean                 # biased variance
    scale = g_ref[...] * jax.lax.rsqrt(var + _EPS)
    bias = b_ref[...] - mean * scale
    out = y_ref[...] * scale + bias
    if len(rest) == 2:                                    # fused residual add
        out = out + rest[0][...]
    o_ref[...] = out


# ------------------------------ pallas_call glue ----------------------------

def _conv_taps(xph, w_taps, taps, out_hw, *, relu, want_stats):
    n, p2, hq, wq, cin = xph.shape
    t, _, cp = w_taps.shape
    ho, wo = out_hw
    m = ho * wo

    kern = functools.partial(_conv_taps_kernel, taps=taps, out_hw=out_hw,
                             relu=relu)

    out_shape = [jax.ShapeDtypeStruct((n * m, cp), jnp.float32)]
    out_specs = [pl.BlockSpec((m, cp), lambda i: (i, 0))]
    if want_stats:
        out_shape.append(jax.ShapeDtypeStruct((1, cp), jnp.float32))
        out_shape.append(jax.ShapeDtypeStruct((1, cp), jnp.float32))
        out_specs.append(pl.BlockSpec((1, cp), lambda i: (0, 0)))
        out_specs.append(pl.BlockSpec((1, cp), lambda i: (0, 0)))

    # The stats outputs accumulate across the image axis -> "arbitrary";
    # without stats the image axis is embarrassingly parallel.
    sem = ("arbitrary",) if want_stats else ("parallel",)

    return pl.pallas_call(
        kern,
        out_shape=tuple(out_shape),
        grid=(n,),
        in_specs=[
            pl.BlockSpec((1, p2, hq, wq, cin), lambda i: (i, 0, 0, 0, 0)),
            pl.BlockSpec((t, cin, cp), lambda i: (0, 0, 0)),
        ],
        out_specs=tuple(out_specs),
        compiler_params=pltpu.CompilerParams(
            dimension_semantics=sem,
            vmem_limit_bytes=_VMEM_LIMIT),
    )(xph, w_taps)


def _pick_row_tile(m):
    for tm in (1024, 512, 256, 128, 64, 32, 16, 8):
        if tm <= m and m % tm == 0:
            return tm
    return m


def _bn_finalize(y_flat, s, ss, gamma_p, beta_p, residual=None):
    m, cp = y_flat.shape
    tm = _pick_row_tile(m)

    in_specs = [
        pl.BlockSpec((tm, cp), lambda i: (i, 0)),
        pl.BlockSpec((1, cp), lambda i: (0, 0)),
        pl.BlockSpec((1, cp), lambda i: (0, 0)),
        pl.BlockSpec((1, cp), lambda i: (0, 0)),
        pl.BlockSpec((1, cp), lambda i: (0, 0)),
    ]
    args = [y_flat, s, ss, gamma_p, beta_p]
    if residual is not None:
        in_specs.append(pl.BlockSpec((tm, cp), lambda i: (i, 0)))
        args.append(residual)

    return pl.pallas_call(
        functools.partial(_bn_finalize_kernel, count=float(m)),
        out_shape=jax.ShapeDtypeStruct((m, cp), jnp.float32),
        grid=(m // tm,),
        in_specs=in_specs,
        out_specs=pl.BlockSpec((tm, cp), lambda i: (i, 0)),
        compiler_params=pltpu.CompilerParams(
            dimension_semantics=("parallel",),
            vmem_limit_bytes=_VMEM_LIMIT),
    )(*args)


# ------------------------------ JAX-side layout glue -------------------------

def _phase_decompose(x_nhwc, k, stride, pad):
    """Zero-pad and space-to-depth so every conv tap is an unstrided slice."""
    n, h, w, c = x_nhwc.shape
    hp, wp = h + 2 * pad, w + 2 * pad
    hq, wq = -(-hp // stride), -(-wp // stride)
    xp = jnp.pad(x_nhwc, ((0, 0),
                          (pad, pad + hq * stride - hp),
                          (pad, pad + wq * stride - wp),
                          (0, 0)))
    xph = xp.reshape(n, hq, stride, wq, stride, c)
    xph = jnp.transpose(xph, (0, 2, 4, 1, 3, 5)).reshape(
        n, stride * stride, hq, wq, c)
    ho = (h + 2 * pad - k) // stride + 1
    wo = (w + 2 * pad - k) // stride + 1
    taps = tuple(((kh % stride) * stride + (kw % stride), kh // stride, kw // stride)
                 for kh in range(k) for kw in range(k))
    return xph, taps, (ho, wo)


def _w_taps_from_torch(w_oihw, cin_pad, cout_pad):
    """torch (Cout,Cin,kh,kw) -> (kh*kw, cin_pad, cout_pad) bf16 tap slabs."""
    cout, cin, kh, kw = w_oihw.shape
    wt = jnp.transpose(w_oihw, (2, 3, 1, 0)).reshape(kh * kw, cin, cout)
    wt = jnp.pad(wt, ((0, 0), (0, cin_pad - cin), (0, cout_pad - cout)))
    return wt.astype(jnp.bfloat16)


def _pad_channels(x, cp):
    return jnp.pad(x, [(0, 0)] * (x.ndim - 1) + [(0, cp - x.shape[-1])])


def resnet_basicblock(x_nhwc, params, stride):
    n, h, w, cin = x_nhwc.shape
    cout = params['wa'].shape[0]
    cp = _round_up(cout, _LANE)

    ga = _pad_channels(params['ga'], cp).reshape(1, cp)
    ba = _pad_channels(params['ba'], cp).reshape(1, cp)
    gb = _pad_channels(params['gb'], cp).reshape(1, cp)
    bb = _pad_channels(params['bb'], cp).reshape(1, cp)

    # conv_a: ReLU -> Conv3x3(stride, pad=1) -> BN (batch stats, two passes)
    xph_a, taps_a, (ho, wo) = _phase_decompose(x_nhwc, 3, stride, 1)
    wa = _w_taps_from_torch(params['wa'], cin, cp)
    y_a, s_a, ss_a = _conv_taps(xph_a, wa, taps_a, (ho, wo),
                                relu=True, want_stats=True)
    a_flat = _bn_finalize(y_a, s_a, ss_a, ga, ba)          # (N*Ho*Wo, CP)

    # shortcut / downsample branch (residual, consumed by the fused add below)
    if stride == 2:
        # AvgPool2d(2,2) + Conv1x1  ==  2x2/stride-2 conv with weight/4 on each
        # of the 4 taps; no ReLU, no BN.
        xph_d, taps_d, _ = _phase_decompose(x_nhwc, 2, 2, 0)
        wd = params['wd'].reshape(cout, cin).T * 0.25       # (Cin, Cout)
        wd = jnp.pad(wd, ((0, 0), (0, cp - cout)))
        wd = jnp.tile(wd[None], (4, 1, 1)).astype(jnp.bfloat16)
        res = _conv_taps(xph_d, wd, taps_d, (ho, wo),
                         relu=False, want_stats=False)[0]
    elif cin != cout:
        # ReLUConvBN 1x1, stride 1, pad 0
        xph_d, taps_d, _ = _phase_decompose(x_nhwc, 1, 1, 0)
        wd = _w_taps_from_torch(params['wd'], cin, cp)
        gd = _pad_channels(params['gd'], cp).reshape(1, cp)
        bd = _pad_channels(params['bd'], cp).reshape(1, cp)
        y_d, s_d, ss_d = _conv_taps(xph_d, wd, taps_d, (h, w),
                                    relu=True, want_stats=True)
        res = _bn_finalize(y_d, s_d, ss_d, gd, bd)
    else:
        res = _pad_channels(x_nhwc.reshape(n * h * w, cin), cp)

    # conv_b: ReLU -> Conv3x3(1, pad=1) -> BN, fused with the residual add.
    a_nhwc = a_flat.reshape(n, ho, wo, cp)
    xph_b, taps_b, _ = _phase_decompose(a_nhwc, 3, 1, 1)
    wb = _w_taps_from_torch(params['wb'], cp, cp)
    y_b, s_b, ss_b = _conv_taps(xph_b, wb, taps_b, (ho, wo),
                                relu=True, want_stats=True)
    out_flat = _bn_finalize(y_b, s_b, ss_b, gb, bb, residual=res)

    return out_flat.reshape(n, ho, wo, cp)[..., :cout]


# ------------------------------ pure-JAX reference ---------------------------

def _ref_block_nchw(x, params, stride, eps=_EPS):
    def conv(z, w, s, p):
        return jax.lax.conv_general_dilated(
            z, w, (s, s), [(p, p), (p, p)],
            dimension_numbers=('NCHW', 'OIHW', 'NCHW'),
            precision=jax.lax.Precision.HIGHEST)

    def bn(y, g, b):
        m = y.mean(axis=(0, 2, 3), keepdims=True)
        v = ((y - m) ** 2).mean(axis=(0, 2, 3), keepdims=True)
        return (y - m) * jax.lax.rsqrt(v + eps) * g.reshape(1, -1, 1, 1) \
            + b.reshape(1, -1, 1, 1)

    a = bn(conv(jnp.maximum(x, 0.0), params['wa'], stride, 1),
           params['ga'], params['ba'])
    b = bn(conv(jnp.maximum(a, 0.0), params['wb'], 1, 1),
           params['gb'], params['bb'])
    cout = params['wa'].shape[0]
    if stride == 2:
        n, c, hh, ww = x.shape
        pooled = x.reshape(n, c, hh // 2, 2, ww // 2, 2).mean(axis=(3, 5))
        res = conv(pooled, params['wd'], 1, 0)
    elif x.shape[1] != cout:
        res = bn(conv(jnp.maximum(x, 0.0), params['wd'], 1, 0),
                 params['gd'], params['bd'])
    else:
        res = x
    return res + b


# ------------------------------------ main -----------------------------------

if __name__ == "__main__":
    key = jax.random.PRNGKey(0)
    N, Cin, H, W = 2, 4, 16, 16
    planes, stride = 8, 2  # exercises the AvgPool + 1x1-conv downsample path

    k1, k2, k3, k4 = jax.random.split(key, 4)
    x_nchw = jax.random.normal(k1, (N, Cin, H, W), jnp.float32)
    params = {
        'wa': jax.random.normal(k2, (planes, Cin, 3, 3), jnp.float32) * 0.1,
        'ga': jnp.ones((planes,), jnp.float32),
        'ba': jnp.zeros((planes,), jnp.float32),
        'wb': jax.random.normal(k3, (planes, planes, 3, 3), jnp.float32) * 0.1,
        'gb': jnp.ones((planes,), jnp.float32),
        'bb': jnp.zeros((planes,), jnp.float32),
        'wd': jax.random.normal(k4, (planes, Cin, 1, 1), jnp.float32) * 0.1,
    }

    x_nhwc = jnp.transpose(x_nchw, (0, 2, 3, 1))
    fwd = jax.jit(functools.partial(resnet_basicblock, stride=stride))
    out_nhwc = fwd(x_nhwc, params)
    jax.block_until_ready(out_nhwc)
    out_nchw = jnp.transpose(out_nhwc, (0, 3, 1, 2))

    ref = _ref_block_nchw(x_nchw, params, stride)
    max_err = float(jnp.max(jnp.abs(out_nchw - ref)))
    assert out_nchw.shape == ref.shape, (out_nchw.shape, ref.shape)
    # bf16 MXU operands with f32 accumulation -> documented looser tolerance
    # vs the f32 HIGHEST-precision reference (observed max err ~1e-2).
    assert jnp.allclose(out_nchw, ref, atol=5e-2, rtol=5e-2), max_err

    print("KERNEL_OK")
</pallas_src>

<mosaic_0001>
module attributes {stable_mosaic.version = 11 : i64} {
  func.func @_conv_taps_kernel(%arg0: i32, %arg1: memref<1x4x9x9x4xf32, #tpu.memory_space<vmem>>, %arg2: memref<9x4x128xbf16, #tpu.memory_space<vmem>>, %arg3: memref<64x128xf32, #tpu.memory_space<vmem>>, %arg4: memref<1x128xf32, #tpu.memory_space<vmem>>, %arg5: memref<1x128xf32, #tpu.memory_space<vmem>>) attributes {dimension_semantics = [#tpu.dimension_semantics<arbitrary>], iteration_bounds = array<i64: 2>, scalar_prefetch = 0 : i64, scratch_operands = 0 : i64, tpu.core_type = #tpu.core_type<tc>, window_params = [{transform_indices = @transform_0, window_bounds = array<i64: 1, 4, 9, 9, 4>}, {pipeline_mode = #tpu.pipeline_mode<synchronous>, transform_indices = @transform_1, window_bounds = array<i64: 9, 4, 128>}, {transform_indices = @transform_2, window_bounds = array<i64: 64, 128>}, {pipeline_mode = #tpu.pipeline_mode<synchronous>, transform_indices = @transform_3, window_bounds = array<i64: 1, 128>}, {pipeline_mode = #tpu.pipeline_mode<synchronous>, transform_indices = @transform_4, window_bounds = array<i64: 1, 128>}]} {
    %cst = arith.constant 0.000000e+00 : f32
    %0 = vector.broadcast %cst : f32 to vector<64x128xf32>
    %c0 = arith.constant 0 : index
    %c0_0 = arith.constant 0 : index
    %c0_1 = arith.constant 0 : index
    %c0_2 = arith.constant 0 : index
    %c0_3 = arith.constant 0 : index
    %1 = vector.load %arg1[%c0, %c0_0, %c0_1, %c0_2, %c0_3] : memref<1x4x9x9x4xf32, #tpu.memory_space<vmem>>, vector<1x1x8x8x4xf32>
    %2 = vector.shape_cast %1 : vector<1x1x8x8x4xf32> to vector<8x8x4xf32>
    %cst_4 = arith.constant 0.000000e+00 : f32
    %3 = vector.broadcast %cst_4 : f32 to vector<8x8x4xf32>
    %4 = arith.maximumf %2, %3 : vector<8x8x4xf32>
    %5 = vector.shape_cast %4 : vector<8x8x4xf32> to vector<64x4xf32>
    %6 = arith.truncf %5 : vector<64x4xf32> to vector<64x4xbf16>
    %c0_5 = arith.constant 0 : index
    %c0_6 = arith.constant 0 : index
    %c0_7 = arith.constant 0 : index
    %7 = vector.load %arg2[%c0_5, %c0_6, %c0_7] : memref<9x4x128xbf16, #tpu.memory_space<vmem>>, vector<1x4x128xbf16>
    %8 = vector.shape_cast %7 : vector<1x4x128xbf16> to vector<4x128xbf16>
    %cst_8 = arith.constant dense<0.000000e+00> : vector<64x128xf32>
    %9 = tpu.matmul %6, %8, %cst_8 {dimension_numbers = #tpu.dot_dimension_numbers<[1], [0], [0], [1], [0, 0, 1, 1], [], []>} : vector<64x4xbf16>, vector<4x128xbf16>, vector<64x128xf32> -> vector<64x128xf32>
    %10 = arith.addf %0, %9 : vector<64x128xf32>
    %c0_9 = arith.constant 0 : index
    %c1 = arith.constant 1 : index
    %c0_10 = arith.constant 0 : index
    %c0_11 = arith.constant 0 : index
    %c0_12 = arith.constant 0 : index
    %11 = vector.load %arg1[%c0_9, %c1, %c0_10, %c0_11, %c0_12] : memref<1x4x9x9x4xf32, #tpu.memory_space<vmem>>, vector<1x1x8x8x4xf32>
    %12 = vector.shape_cast %11 : vector<1x1x8x8x4xf32> to vector<8x8x4xf32>
    %cst_13 = arith.constant 0.000000e+00 : f32
    %13 = vector.broadcast %cst_13 : f32 to vector<8x8x4xf32>
    %14 = arith.maximumf %12, %13 : vector<8x8x4xf32>
    %15 = vector.shape_cast %14 : vector<8x8x4xf32> to vector<64x4xf32>
    %16 = arith.truncf %15 : vector<64x4xf32> to vector<64x4xbf16>
    %c1_14 = arith.constant 1 : index
    %c0_15 = arith.constant 0 : index
    %c0_16 = arith.constant 0 : index
    %17 = vector.load %arg2[%c1_14, %c0_15, %c0_16] : memref<9x4x128xbf16, #tpu.memory_space<vmem>>, vector<1x4x128xbf16>
    %18 = vector.shape_cast %17 : vector<1x4x128xbf16> to vector<4x128xbf16>
    %cst_17 = arith.constant dense<0.000000e+00> : vector<64x128xf32>
    %19 = tpu.matmul %16, %18, %cst_17 {dimension_numbers = #tpu.dot_dimension_numbers<[1], [0], [0], [1], [0, 0, 1, 1], [], []>} : vector<64x4xbf16>, vector<4x128xbf16>, vector<64x128xf32> -> vector<64x128xf32>
    %20 = arith.addf %10, %19 : vector<64x128xf32>
    %c0_18 = arith.constant 0 : index
    %c0_19 = arith.constant 0 : index
    %c0_20 = arith.constant 0 : index
    %c1_21 = arith.constant 1 : index
    %c0_22 = arith.constant 0 : index
    %21 = vector.load %arg1[%c0_18, %c0_19, %c0_20, %c1_21, %c0_22] : memref<1x4x9x9x4xf32, #tpu.memory_space<vmem>>, vector<1x1x8x8x4xf32>
    %22 = vector.shape_cast %21 : vector<1x1x8x8x4xf32> to vector<8x8x4xf32>
    %cst_23 = arith.constant 0.000000e+00 : f32
    %23 = vector.broadcast %cst_23 : f32 to vector<8x8x4xf32>
    %24 = arith.maximumf %22, %23 : vector<8x8x4xf32>
    %25 = vector.shape_cast %24 : vector<8x8x4xf32> to vector<64x4xf32>
    %26 = arith.truncf %25 : vector<64x4xf32> to vector<64x4xbf16>
    %c2 = arith.constant 2 : index
    %c0_24 = arith.constant 0 : index
    %c0_25 = arith.constant 0 : index
    %27 = vector.load %arg2[%c2, %c0_24, %c0_25] : memref<9x4x128xbf16, #tpu.memory_space<vmem>>, vector<1x4x128xbf16>
    %28 = vector.shape_cast %27 : vector<1x4x128xbf16> to vector<4x128xbf16>
    %cst_26 = arith.constant dense<0.000000e+00> : vector<64x128xf32>
    %29 = tpu.matmul %26, %28, %cst_26 {dimension_numbers = #tpu.dot_dimension_numbers<[1], [0], [0], [1], [0, 0, 1, 1], [], []>} : vector<64x4xbf16>, vector<4x128xbf16>, vector<64x128xf32> -> vector<64x128xf32>
    %30 = arith.addf %20, %29 : vector<64x128xf32>
    %c0_27 = arith.constant 0 : index
    %c2_28 = arith.constant 2 : index
    %c0_29 = arith.constant 0 : index
    %c0_30 = arith.constant 0 : index
    %c0_31 = arith.constant 0 : index
    %31 = vector.load %arg1[%c0_27, %c2_28, %c0_29, %c0_30, %c0_31] : memref<1x4x9x9x4xf32, #tpu.memory_space<vmem>>, vector<1x1x8x8x4xf32>
    %32 = vector.shape_cast %31 : vector<1x1x8x8x4xf32> to vector<8x8x4xf32>
    %cst_32 = arith.constant 0.000000e+00 : f32
    %33 = vector.broadcast %cst_32 : f32 to vector<8x8x4xf32>
    %34 = arith.maximumf %32, %33 : vector<8x8x4xf32>
    %35 = vector.shape_cast %34 : vector<8x8x4xf32> to vector<64x4xf32>
    %36 = arith.truncf %35 : vector<64x4xf32> to vector<64x4xbf16>
    %c3 = arith.constant 3 : index
    %c0_33 = arith.constant 0 : index
    %c0_34 = arith.constant 0 : index
    %37 = vector.load %arg2[%c3, %c0_33, %c0_34] : memref<9x4x128xbf16, #tpu.memory_space<vmem>>, vector<1x4x128xbf16>
    %38 = vector.shape_cast %37 : vector<1x4x128xbf16> to vector<4x128xbf16>
    %cst_35 = arith.constant dense<0.000000e+00> : vector<64x128xf32>
    %39 = tpu.matmul %36, %38, %cst_35 {dimension_numbers = #tpu.dot_dimension_numbers<[1], [0], [0], [1], [0, 0, 1, 1], [], []>} : vector<64x4xbf16>, vector<4x128xbf16>, vector<64x128xf32> -> vector<64x128xf32>
    %40 = arith.addf %30, %39 : vector<64x128xf32>
    %c0_36 = arith.constant 0 : index
    %c3_37 = arith.constant 3 : index
    %c0_38 = arith.constant 0 : index
    %c0_39 = arith.constant 0 : index
    %c0_40 = arith.constant 0 : index
    %41 = vector.load %arg1[%c0_36, %c3_37, %c0_38, %c0_39, %c0_40] : memref<1x4x9x9x4xf32, #tpu.memory_space<vmem>>, vector<1x1x8x8x4xf32>
    %42 = vector.shape_cast %41 : vector<1x1x8x8x4xf32> to vector<8x8x4xf32>
    %cst_41 = arith.constant 0.000000e+00 : f32
    %43 = vector.broadcast %cst_41 : f32 to vector<8x8x4xf32>
    %44 = arith.maximumf %42, %43 : vector<8x8x4xf32>
    %45 = vector.shape_cast %44 : vector<8x8x4xf32> to vector<64x4xf32>
    %46 = arith.truncf %45 : vector<64x4xf32> to vector<64x4xbf16>
    %c4 = arith.constant 4 : index
    %c0_42 = arith.constant 0 : index
    %c0_43 = arith.constant 0 : index
    %47 = vector.load %arg2[%c4, %c0_42, %c0_43] : memref<9x4x128xbf16, #tpu.memory_space<vmem>>, vector<1x4x128xbf16>
    %48 = vector.shape_cast %47 : vector<1x4x128xbf16> to vector<4x128xbf16>
    %cst_44 = arith.constant dense<0.000000e+00> : vector<64x128xf32>
    %49 = tpu.matmul %46, %48, %cst_44 {dimension_numbers = #tpu.dot_dimension_numbers<[1], [0], [0], [1], [0, 0, 1, 1], [], []>} : vector<64x4xbf16>, vector<4x128xbf16>, vector<64x128xf32> -> vector<64x128xf32>
    %50 = arith.addf %40, %49 : vector<64x128xf32>
    %c0_45 = arith.constant 0 : index
    %c2_46 = arith.constant 2 : index
    %c0_47 = arith.constant 0 : index
    %c1_48 = arith.constant 1 : index
    %c0_49 = arith.constant 0 : index
    %51 = vector.load %arg1[%c0_45, %c2_46, %c0_47, %c1_48, %c0_49] : memref<1x4x9x9x4xf32, #tpu.memory_space<vmem>>, vector<1x1x8x8x4xf32>
    %52 = vector.shape_cast %51 : vector<1x1x8x8x4xf32> to vector<8x8x4xf32>
    %cst_50 = arith.constant 0.000000e+00 : f32
    %53 = vector.broadcast %cst_50 : f32 to vector<8x8x4xf32>
    %54 = arith.maximumf %52, %53 : vector<8x8x4xf32>
    %55 = vector.shape_cast %54 : vector<8x8x4xf32> to vector<64x4xf32>
    %56 = arith.truncf %55 : vector<64x4xf32> to vector<64x4xbf16>
    %c5 = arith.constant 5 : index
    %c0_51 = arith.constant 0 : index
    %c0_52 = arith.constant 0 : index
    %57 = vector.load %arg2[%c5, %c0_51, %c0_52] : memref<9x4x128xbf16, #tpu.memory_space<vmem>>, vector<1x4x128xbf16>
    %58 = vector.shape_cast %57 : vector<1x4x128xbf16> to vector<4x128xbf16>
    %cst_53 = arith.constant dense<0.000000e+00> : vector<64x128xf32>
    %59 = tpu.matmul %56, %58, %cst_53 {dimension_numbers = #tpu.dot_dimension_numbers<[1], [0], [0], [1], [0, 0, 1, 1], [], []>} : vector<64x4xbf16>, vector<4x128xbf16>, vector<64x128xf32> -> vector<64x128xf32>
    %60 = arith.addf %50, %59 : vector<64x128xf32>
    %c0_54 = arith.constant 0 : index
    %c0_55 = arith.constant 0 : index
    %c1_56 = arith.constant 1 : index
    %c0_57 = arith.constant 0 : index
    %c0_58 = arith.constant 0 : index
    %61 = vector.load %arg1[%c0_54, %c0_55, %c1_56, %c0_57, %c0_58] : memref<1x4x9x9x4xf32, #tpu.memory_space<vmem>>, vector<1x1x8x8x4xf32>
    %62 = vector.shape_cast %61 : vector<1x1x8x8x4xf32> to vector<8x8x4xf32>
    %cst_59 = arith.constant 0.000000e+00 : f32
    %63 = vector.broadcast %cst_59 : f32 to vector<8x8x4xf32>
    %64 = arith.maximumf %62, %63 : vector<8x8x4xf32>
    %65 = vector.shape_cast %64 : vector<8x8x4xf32> to vector<64x4xf32>
    %66 = arith.truncf %65 : vector<64x4xf32> to vector<64x4xbf16>
    %c6 = arith.constant 6 : index
    %c0_60 = arith.constant 0 : index
    %c0_61 = arith.constant 0 : index
    %67 = vector.load %arg2[%c6, %c0_60, %c0_61] : memref<9x4x128xbf16, #tpu.memory_space<vmem>>, vector<1x4x128xbf16>
    %68 = vector.shape_cast %67 : vector<1x4x128xbf16> to vector<4x128xbf16>
    %cst_62 = arith.constant dense<0.000000e+00> : vector<64x128xf32>
    %69 = tpu.matmul %66, %68, %cst_62 {dimension_numbers = #tpu.dot_dimension_numbers<[1], [0], [0], [1], [0, 0, 1, 1], [], []>} : vector<64x4xbf16>, vector<4x128xbf16>, vector<64x128xf32> -> vector<64x128xf32>
    %70 = arith.addf %60, %69 : vector<64x128xf32>
    %c0_63 = arith.constant 0 : index
    %c1_64 = arith.constant 1 : index
    %c1_65 = arith.constant 1 : index
    %c0_66 = arith.constant 0 : index
    %c0_67 = arith.constant 0 : index
    %71 = vector.load %arg1[%c0_63, %c1_64, %c1_65, %c0_66, %c0_67] : memref<1x4x9x9x4xf32, #tpu.memory_space<vmem>>, vector<1x1x8x8x4xf32>
    %72 = vector.shape_cast %71 : vector<1x1x8x8x4xf32> to vector<8x8x4xf32>
    %cst_68 = arith.constant 0.000000e+00 : f32
    %73 = vector.broadcast %cst_68 : f32 to vector<8x8x4xf32>
    %74 = arith.maximumf %72, %73 : vector<8x8x4xf32>
    %75 = vector.shape_cast %74 : vector<8x8x4xf32> to vector<64x4xf32>
    %76 = arith.truncf %75 : vector<64x4xf32> to vector<64x4xbf16>
    %c7 = arith.constant 7 : index
    %c0_69 = arith.constant 0 : index
    %c0_70 = arith.constant 0 : index
    %77 = vector.load %arg2[%c7, %c0_69, %c0_70] : memref<9x4x128xbf16, #tpu.memory_space<vmem>>, vector<1x4x128xbf16>
    %78 = vector.shape_cast %77 : vector<1x4x128xbf16> to vector<4x128xbf16>
    %cst_71 = arith.constant dense<0.000000e+00> : vector<64x128xf32>
    %79 = tpu.matmul %76, %78, %cst_71 {dimension_numbers = #tpu.dot_dimension_numbers<[1], [0], [0], [1], [0, 0, 1, 1], [], []>} : vector<64x4xbf16>, vector<4x128xbf16>, vector<64x128xf32> -> vector<64x128xf32>
    %80 = arith.addf %70, %79 : vector<64x128xf32>
    %c0_72 = arith.constant 0 : index
    %c0_73 = arith.constant 0 : index
    %c1_74 = arith.constant 1 : index
    %c1_75 = arith.constant 1 : index
    %c0_76 = arith.constant 0 : index
    %81 = vector.load %arg1[%c0_72, %c0_73, %c1_74, %c1_75, %c0_76] : memref<1x4x9x9x4xf32, #tpu.memory_space<vmem>>, vector<1x1x8x8x4xf32>
    %82 = vector.shape_cast %81 : vector<1x1x8x8x4xf32> to vector<8x8x4xf32>
    %cst_77 = arith.constant 0.000000e+00 : f32
    %83 = vector.broadcast %cst_77 : f32 to vector<8x8x4xf32>
    %84 = arith.maximumf %82, %83 : vector<8x8x4xf32>
    %85 = vector.shape_cast %84 : vector<8x8x4xf32> to vector<64x4xf32>
    %86 = arith.truncf %85 : vector<64x4xf32> to vector<64x4xbf16>
    %c8 = arith.constant 8 : index
    %c0_78 = arith.constant 0 : index
    %c0_79 = arith.constant 0 : index
    %87 = vector.load %arg2[%c8, %c0_78, %c0_79] : memref<9x4x128xbf16, #tpu.memory_space<vmem>>, vector<1x4x128xbf16>
    %88 = vector.shape_cast %87 : vector<1x4x128xbf16> to vector<4x128xbf16>
    %cst_80 = arith.constant dense<0.000000e+00> : vector<64x128xf32>
    %89 = tpu.matmul %86, %88, %cst_80 {dimension_numbers = #tpu.dot_dimension_numbers<[1], [0], [0], [1], [0, 0, 1, 1], [], []>} : vector<64x4xbf16>, vector<4x128xbf16>, vector<64x128xf32> -> vector<64x128xf32>
    %90 = arith.addf %80, %89 : vector<64x128xf32>
    %c0_81 = arith.constant 0 : index
    %c0_82 = arith.constant 0 : index
    %91 = vector.load %arg3[%c0_81, %c0_82] : memref<64x128xf32, #tpu.memory_space<vmem>>, vector<64x128xf32>
    tpu.vector_store %arg3[%c0_81, %c0_82], %90 {strides = array<i32>} : memref<64x128xf32, #tpu.memory_space<vmem>>, vector<64x128xf32>,
    %c0_i32 = arith.constant 0 : i32
    %92 = arith.cmpi eq, %arg0, %c0_i32 : i32
    %93 = arith.extui %92 : i1 to i32
    %c0_i32_83 = arith.constant 0 : i32
    %94 = arith.cmpi ne, %93, %c0_i32_83 : i32
    scf.if %94 {
      %cst_94 = arith.constant 0.000000e+00 : f32
      %106 = vector.broadcast %cst_94 : f32 to vector<1x128xf32>
      %c0_95 = arith.constant 0 : index
      %c0_96 = arith.constant 0 : index
      %107 = vector.load %arg4[%c0_95, %c0_96] : memref<1x128xf32, #tpu.memory_space<vmem>>, vector<1x128xf32>
      tpu.vector_store %arg4[%c0_95, %c0_96], %106 {strides = array<i32>} : memref<1x128xf32, #tpu.memory_space<vmem>>, vector<1x128xf32>,
      %cst_97 = arith.constant 0.000000e+00 : f32
      %108 = vector.broadcast %cst_97 : f32 to vector<1x128xf32>
      %c0_98 = arith.constant 0 : index
      %c0_99 = arith.constant 0 : index
      %109 = vector.load %arg5[%c0_98, %c0_99] : memref<1x128xf32, #tpu.memory_space<vmem>>, vector<1x128xf32>
      tpu.vector_store %arg5[%c0_98, %c0_99], %108 {strides = array<i32>} : memref<1x128xf32, #tpu.memory_space<vmem>>, vector<1x128xf32>,
    } else {
    }
    %c0_84 = arith.constant 0 : index
    %c0_85 = arith.constant 0 : index
    %95 = vector.load %arg4[%c0_84, %c0_85] : memref<1x128xf32, #tpu.memory_space<vmem>>, vector<1x128xf32>
    %cst_86 = arith.constant dense<0.000000e+00> : vector<128xf32>
    %96 = vector.multi_reduction <add>, %90, %cst_86 [0] : vector<64x128xf32> to vector<128xf32>
    %97 = vector.shape_cast %96 : vector<128xf32> to vector<1x128xf32>
    %98 = arith.addf %95, %97 : vector<1x128xf32>
    %c0_87 = arith.constant 0 : index
    %c0_88 = arith.constant 0 : index
    %99 = vector.load %arg4[%c0_87, %c0_88] : memref<1x128xf32, #tpu.memory_space<vmem>>, vector<1x128xf32>
    tpu.vector_store %arg4[%c0_87, %c0_88], %98 {strides = array<i32>} : memref<1x128xf32, #tpu.memory_space<vmem>>, vector<1x128xf32>,
    %c0_89 = arith.constant 0 : index
    %c0_90 = arith.constant 0 : index
    %100 = vector.load %arg5[%c0_89, %c0_90] : memref<1x128xf32, #tpu.memory_space<vmem>>, vector<1x128xf32>
    %101 = arith.mulf %90, %90 : vector<64x128xf32>
    %cst_91 = arith.constant dense<0.000000e+00> : vector<128xf32>
    %102 = vector.multi_reduction <add>, %101, %cst_91 [0] : vector<64x128xf32> to vector<128xf32>
    %103 = vector.shape_cast %102 : vector<128xf32> to vector<1x128xf32>
    %104 = arith.addf %100, %103 : vector<1x128xf32>
    %c0_92 = arith.constant 0 : index
    %c0_93 = arith.constant 0 : index
    %105 = vector.load %arg5[%c0_92, %c0_93] : memref<1x128xf32, #tpu.memory_space<vmem>>, vector<1x128xf32>
    tpu.vector_store %arg5[%c0_92, %c0_93], %104 {strides = array<i32>} : memref<1x128xf32, #tpu.memory_space<vmem>>, vector<1x128xf32>,
    return
  }
  func.func @transform_0(%arg0: i32) -> (i32, i32, i32, i32, i32) {
    %c0_i32 = arith.constant 0 : i32
    %c0_i32_0 = arith.constant 0 : i32
    %c0_i32_1 = arith.constant 0 : i32
    %c0_i32_2 = arith.constant 0 : i32
    %c0_i32_3 = arith.constant 0 : i32
    return %arg0, %c0_i32, %c0_i32_0, %c0_i32_1, %c0_i32_2 : i32, i32, i32, i32, i32
  }
  func.func @transform_1(%arg0: i32) -> (i32, i32, i32) {
    %c0_i32 = arith.constant 0 : i32
    %c0_i32_0 = arith.constant 0 : i32
    %c0_i32_1 = arith.constant 0 : i32
    %c0_i32_2 = arith.constant 0 : i32
    return %c0_i32, %c0_i32_0, %c0_i32_1 : i32, i32, i32
  }
  func.func @transform_2(%arg0: i32) -> (i32, i32) {
    %c0_i32 = arith.constant 0 : i32
    %c0_i32_0 = arith.constant 0 : i32
    return %arg0, %c0_i32 : i32, i32
  }
  func.func @transform_3(%arg0: i32) -> (i32, i32) {
    %c0_i32 = arith.constant 0 : i32
    %c0_i32_0 = arith.constant 0 : i32
    %c0_i32_1 = arith.constant 0 : i32
    return %c0_i32, %c0_i32_0 : i32, i32
  }
  func.func @transform_4(%arg0: i32) -> (i32, i32) {
    %c0_i32 = arith.constant 0 : i32
    %c0_i32_0 = arith.constant 0 : i32
    %c0_i32_1 = arith.constant 0 : i32
    return %c0_i32, %c0_i32_0 : i32, i32
  }
}

module attributes {stable_mosaic.version = 11 : i64} {
  func.func @_bn_finalize_kernel(%arg0: i32, %arg1: memref<128x128xf32, #tpu.memory_space<vmem>>, %arg2: memref<1x128xf32, #tpu.memory_space<vmem>>, %arg3: memref<1x128xf32, #tpu.memory_space<vmem>>, %arg4: memref<1x128xf32, #tpu.memory_space<vmem>>, %arg5: memref<1x128xf32, #tpu.memory_space<vmem>>, %arg6: memref<128x128xf32, #tpu.memory_space<vmem>>) attributes {dimension_semantics = [#tpu.dimension_semantics<parallel>], iteration_bounds = array<i64: 1>, scalar_prefetch = 0 : i64, scratch_operands = 0 : i64, tpu.core_type = #tpu.core_type<tc>, window_params = [{transform_indices = @transform_0, window_bounds = array<i64: 128, 128>}, {pipeline_mode = #tpu.pipeline_mode<synchronous>, transform_indices = @transform_1, window_bounds = array<i64: 1, 128>}, {pipeline_mode = #tpu.pipeline_mode<synchronous>, transform_indices = @transform_2, window_bounds = array<i64: 1, 128>}, {pipeline_mode = #tpu.pipeline_mode<synchronous>, transform_indices = @transform_3, window_bounds = array<i64: 1, 128>}, {pipeline_mode = #tpu.pipeline_mode<synchronous>, transform_indices = @transform_4, window_bounds = array<i64: 1, 128>}, {transform_indices = @transform_5, window_bounds = array<i64: 128, 128>}]} {
    %c0 = arith.constant 0 : index
    %c0_0 = arith.constant 0 : index
    %0 = vector.load %arg2[%c0, %c0_0] : memref<1x128xf32, #tpu.memory_space<vmem>>, vector<1x128xf32>
    %cst = arith.constant 7.812500e-03 : f32
    %1 = vector.broadcast %cst : f32 to vector<1x128xf32>
    %2 = arith.mulf %0, %1 : vector<1x128xf32>
    %c0_1 = arith.constant 0 : index
    %c0_2 = arith.constant 0 : index
    %3 = vector.load %arg3[%c0_1, %c0_2] : memref<1x128xf32, #tpu.memory_space<vmem>>, vector<1x128xf32>
    %cst_3 = arith.constant 7.812500e-03 : f32
    %4 = vector.broadcast %cst_3 : f32 to vector<1x128xf32>
    %5 = arith.mulf %3, %4 : vector<1x128xf32>
    %6 = arith.mulf %2, %2 : vector<1x128xf32>
    %7 = arith.subf %5, %6 : vector<1x128xf32>
    %c0_4 = arith.constant 0 : index
    %c0_5 = arith.constant 0 : index
    %8 = vector.load %arg4[%c0_4, %c0_5] : memref<1x128xf32, #tpu.memory_space<vmem>>, vector<1x128xf32>
    %cst_6 = arith.constant 9.99999974E-6 : f32
    %9 = vector.broadcast %cst_6 : f32 to vector<1x128xf32>
    %10 = arith.addf %7, %9 : vector<1x128xf32>
    %11 = math.rsqrt %10 : vector<1x128xf32>
    %12 = arith.mulf %8, %11 : vector<1x128xf32>
    %c0_7 = arith.constant 0 : index
    %c0_8 = arith.constant 0 : index
    %13 = vector.load %arg5[%c0_7, %c0_8] : memref<1x128xf32, #tpu.memory_space<vmem>>, vector<1x128xf32>
    %14 = arith.mulf %2, %12 : vector<1x128xf32>
    %15 = arith.subf %13, %14 : vector<1x128xf32>
    %c0_9 = arith.constant 0 : index
    %c0_10 = arith.constant 0 : index
    %16 = vector.load %arg1[%c0_9, %c0_10] : memref<128x128xf32, #tpu.memory_space<vmem>>, vector<128x128xf32>
    %17 = vector.broadcast %12 : vector<1x128xf32> to vector<128x128xf32>
    %18 = arith.mulf %16, %17 : vector<128x128xf32>
    %19 = vector.broadcast %15 : vector<1x128xf32> to vector<128x128xf32>
    %20 = arith.addf %18, %19 : vector<128x128xf32>
    %c0_11 = arith.constant 0 : index
    %c0_12 = arith.constant 0 : index
    %21 = vector.load %arg6[%c0_11, %c0_12] : memref<128x128xf32, #tpu.memory_space<vmem>>, vector<128x128xf32>
    tpu.vector_store %arg6[%c0_11, %c0_12], %20 {strides = array<i32>} : memref<128x128xf32, #tpu.memory_space<vmem>>, vector<128x128xf32>,
    return
  }
  func.func @transform_0(%arg0: i32) -> (i32, i32) {
    %c0_i32 = arith.constant 0 : i32
    %c0_i32_0 = arith.constant 0 : i32
    return %arg0, %c0_i32 : i32, i32
  }
  func.func @transform_1(%arg0: i32) -> (i32, i32) {
    %c0_i32 = arith.constant 0 : i32
    %c0_i32_0 = arith.constant 0 : i32
    %c0_i32_1 = arith.constant 0 : i32
    return %c0_i32, %c0_i32_0 : i32, i32
  }
  func.func @transform_2(%arg0: i32) -> (i32, i32) {
    %c0_i32 = arith.constant 0 : i32
    %c0_i32_0 = arith.constant 0 : i32
    %c0_i32_1 = arith.constant 0 : i32
    return %c0_i32, %c0_i32_0 : i32, i32
  }
  func.func @transform_3(%arg0: i32) -> (i32, i32) {
    %c0_i32 = arith.constant 0 : i32
    %c0_i32_0 = arith.constant 0 : i32
    %c0_i32_1 = arith.constant 0 : i32
    return %c0_i32, %c0_i32_0 : i32, i32
  }
  func.func @transform_4(%arg0: i32) -> (i32, i32) {
    %c0_i32 = arith.constant 0 : i32
    %c0_i32_0 = arith.constant 0 : i32
    %c0_i32_1 = arith.constant 0 : i32
    return %c0_i32, %c0_i32_0 : i32, i32
  }
  func.func @transform_5(%arg0: i32) -> (i32, i32) {
    %c0_i32 = arith.constant 0 : i32
    %c0_i32_0 = arith.constant 0 : i32
    return %arg0, %c0_i32 : i32, i32
  }
}

module attributes {stable_mosaic.version = 11 : i64} {
  func.func @_conv_taps_kernel(%arg0: i32, %arg1: memref<1x1x10x10x128xf32, #tpu.memory_space<vmem>>, %arg2: memref<9x128x128xbf16, #tpu.memory_space<vmem>>, %arg3: memref<64x128xf32, #tpu.memory_space<vmem>>, %arg4: memref<1x128xf32, #tpu.memory_space<vmem>>, %arg5: memref<1x128xf32, #tpu.memory_space<vmem>>) attributes {dimension_semantics = [#tpu.dimension_semantics<arbitrary>], iteration_bounds = array<i64: 2>, scalar_prefetch = 0 : i64, scratch_operands = 0 : i64, tpu.core_type = #tpu.core_type<tc>, window_params = [{transform_indices = @transform_0, window_bounds = array<i64: 1, 1, 10, 10, 128>}, {pipeline_mode = #tpu.pipeline_mode<synchronous>, transform_indices = @transform_1, window_bounds = array<i64: 9, 128, 128>}, {transform_indices = @transform_2, window_bounds = array<i64: 64, 128>}, {pipeline_mode = #tpu.pipeline_mode<synchronous>, transform_indices = @transform_3, window_bounds = array<i64: 1, 128>}, {pipeline_mode = #tpu.pipeline_mode<synchronous>, transform_indices = @transform_4, window_bounds = array<i64: 1, 128>}]} {
    %cst = arith.constant 0.000000e+00 : f32
    %0 = vector.broadcast %cst : f32 to vector<64x128xf32>
    %c0 = arith.constant 0 : index
    %c0_0 = arith.constant 0 : index
    %c0_1 = arith.constant 0 : index
    %c0_2 = arith.constant 0 : index
    %c0_3 = arith.constant 0 : index
    %1 = vector.load %arg1[%c0, %c0_0, %c0_1, %c0_2, %c0_3] : memref<1x1x10x10x128xf32, #tpu.memory_space<vmem>>, vector<1x1x8x8x128xf32>
    %2 = vector.shape_cast %1 : vector<1x1x8x8x128xf32> to vector<8x8x128xf32>
    %cst_4 = arith.constant 0.000000e+00 : f32
    %3 = vector.broadcast %cst_4 : f32 to vector<8x8x128xf32>
    %4 = arith.maximumf %2, %3 : vector<8x8x128xf32>
    %5 = vector.shape_cast %4 : vector<8x8x128xf32> to vector<64x128xf32>
    %6 = arith.truncf %5 : vector<64x128xf32> to vector<64x128xbf16>
    %c0_5 = arith.constant 0 : index
    %c0_6 = arith.constant 0 : index
    %c0_7 = arith.constant 0 : index
    %7 = vector.load %arg2[%c0_5, %c0_6, %c0_7] : memref<9x128x128xbf16, #tpu.memory_space<vmem>>, vector<1x128x128xbf16>
    %8 = vector.shape_cast %7 : vector<1x128x128xbf16> to vector<128x128xbf16>
    %cst_8 = arith.constant dense<0.000000e+00> : vector<64x128xf32>
    %9 = tpu.matmul %6, %8, %cst_8 {dimension_numbers = #tpu.dot_dimension_numbers<[1], [0], [0], [1], [0, 0, 1, 1], [], []>} : vector<64x128xbf16>, vector<128x128xbf16>, vector<64x128xf32> -> vector<64x128xf32>
    %10 = arith.addf %0, %9 : vector<64x128xf32>
    %c0_9 = arith.constant 0 : index
    %c0_10 = arith.constant 0 : index
    %c0_11 = arith.constant 0 : index
    %c1 = arith.constant 1 : index
    %c0_12 = arith.constant 0 : index
    %11 = vector.load %arg1[%c0_9, %c0_10, %c0_11, %c1, %c0_12] : memref<1x1x10x10x128xf32, #tpu.memory_space<vmem>>, vector<1x1x8x8x128xf32>
    %12 = vector.shape_cast %11 : vector<1x1x8x8x128xf32> to vector<8x8x128xf32>
    %cst_13 = arith.constant 0.000000e+00 : f32
    %13 = vector.broadcast %cst_13 : f32 to vector<8x8x128xf32>
    %14 = arith.maximumf %12, %13 : vector<8x8x128xf32>
    %15 = vector.shape_cast %14 : vector<8x8x128xf32> to vector<64x128xf32>
    %16 = arith.truncf %15 : vector<64x128xf32> to vector<64x128xbf16>
    %c1_14 = arith.constant 1 : index
    %c0_15 = arith.constant 0 : index
    %c0_16 = arith.constant 0 : index
    %17 = vector.load %arg2[%c1_14, %c0_15, %c0_16] : memref<9x128x128xbf16, #tpu.memory_space<vmem>>, vector<1x128x128xbf16>
    %18 = vector.shape_cast %17 : vector<1x128x128xbf16> to vector<128x128xbf16>
    %cst_17 = arith.constant dense<0.000000e+00> : vector<64x128xf32>
    %19 = tpu.matmul %16, %18, %cst_17 {dimension_numbers = #tpu.dot_dimension_numbers<[1], [0], [0], [1], [0, 0, 1, 1], [], []>} : vector<64x128xbf16>, vector<128x128xbf16>, vector<64x128xf32> -> vector<64x128xf32>
    %20 = arith.addf %10, %19 : vector<64x128xf32>
    %c0_18 = arith.constant 0 : index
    %c0_19 = arith.constant 0 : index
    %c0_20 = arith.constant 0 : index
    %c2 = arith.constant 2 : index
    %c0_21 = arith.constant 0 : index
    %21 = vector.load %arg1[%c0_18, %c0_19, %c0_20, %c2, %c0_21] : memref<1x1x10x10x128xf32, #tpu.memory_space<vmem>>, vector<1x1x8x8x128xf32>
    %22 = vector.shape_cast %21 : vector<1x1x8x8x128xf32> to vector<8x8x128xf32>
    %cst_22 = arith.constant 0.000000e+00 : f32
    %23 = vector.broadcast %cst_22 : f32 to vector<8x8x128xf32>
    %24 = arith.maximumf %22, %23 : vector<8x8x128xf32>
    %25 = vector.shape_cast %24 : vector<8x8x128xf32> to vector<64x128xf32>
    %26 = arith.truncf %25 : vector<64x128xf32> to vector<64x128xbf16>
    %c2_23 = arith.constant 2 : index
    %c0_24 = arith.constant 0 : index
    %c0_25 = arith.constant 0 : index
    %27 = vector.load %arg2[%c2_23, %c0_24, %c0_25] : memref<9x128x128xbf16, #tpu.memory_space<vmem>>, vector<1x128x128xbf16>
    %28 = vector.shape_cast %27 : vector<1x128x128xbf16> to vector<128x128xbf16>
    %cst_26 = arith.constant dense<0.000000e+00> : vector<64x128xf32>
    %29 = tpu.matmul %26, %28, %cst_26 {dimension_numbers = #tpu.dot_dimension_numbers<[1], [0], [0], [1], [0, 0, 1, 1], [], []>} : vector<64x128xbf16>, vector<128x128xbf16>, vector<64x128xf32> -> vector<64x128xf32>
    %30 = arith.addf %20, %29 : vector<64x128xf32>
    %c0_27 = arith.constant 0 : index
    %c0_28 = arith.constant 0 : index
    %c1_29 = arith.constant 1 : index
    %c0_30 = arith.constant 0 : index
    %c0_31 = arith.constant 0 : index
    %31 = vector.load %arg1[%c0_27, %c0_28, %c1_29, %c0_30, %c0_31] : memref<1x1x10x10x128xf32, #tpu.memory_space<vmem>>, vector<1x1x8x8x128xf32>
    %32 = vector.shape_cast %31 : vector<1x1x8x8x128xf32> to vector<8x8x128xf32>
    %cst_32 = arith.constant 0.000000e+00 : f32
    %33 = vector.broadcast %cst_32 : f32 to vector<8x8x128xf32>
    %34 = arith.maximumf %32, %33 : vector<8x8x128xf32>
    %35 = vector.shape_cast %34 : vector<8x8x128xf32> to vector<64x128xf32>
    %36 = arith.truncf %35 : vector<64x128xf32> to vector<64x128xbf16>
    %c3 = arith.constant 3 : index
    %c0_33 = arith.constant 0 : index
    %c0_34 = arith.constant 0 : index
    %37 = vector.load %arg2[%c3, %c0_33, %c0_34] : memref<9x128x128xbf16, #tpu.memory_space<vmem>>, vector<1x128x128xbf16>
    %38 = vector.shape_cast %37 : vector<1x128x128xbf16> to vector<128x128xbf16>
    %cst_35 = arith.constant dense<0.000000e+00> : vector<64x128xf32>
    %39 = tpu.matmul %36, %38, %cst_35 {dimension_numbers = #tpu.dot_dimension_numbers<[1], [0], [0], [1], [0, 0, 1, 1], [], []>} : vector<64x128xbf16>, vector<128x128xbf16>, vector<64x128xf32> -> vector<64x128xf32>
    %40 = arith.addf %30, %39 : vector<64x128xf32>
    %c0_36 = arith.constant 0 : index
    %c0_37 = arith.constant 0 : index
    %c1_38 = arith.constant 1 : index
    %c1_39 = arith.constant 1 : index
    %c0_40 = arith.constant 0 : index
    %41 = vector.load %arg1[%c0_36, %c0_37, %c1_38, %c1_39, %c0_40] : memref<1x1x10x10x128xf32, #tpu.memory_space<vmem>>, vector<1x1x8x8x128xf32>
    %42 = vector.shape_cast %41 : vector<1x1x8x8x128xf32> to vector<8x8x128xf32>
    %cst_41 = arith.constant 0.000000e+00 : f32
    %43 = vector.broadcast %cst_41 : f32 to vector<8x8x128xf32>
    %44 = arith.maximumf %42, %43 : vector<8x8x128xf32>
    %45 = vector.shape_cast %44 : vector<8x8x128xf32> to vector<64x128xf32>
    %46 = arith.truncf %45 : vector<64x128xf32> to vector<64x128xbf16>
    %c4 = arith.constant 4 : index
    %c0_42 = arith.constant 0 : index
    %c0_43 = arith.constant 0 : index
    %47 = vector.load %arg2[%c4, %c0_42, %c0_43] : memref<9x128x128xbf16, #tpu.memory_space<vmem>>, vector<1x128x128xbf16>
    %48 = vector.shape_cast %47 : vector<1x128x128xbf16> to vector<128x128xbf16>
    %cst_44 = arith.constant dense<0.000000e+00> : vector<64x128xf32>
    %49 = tpu.matmul %46, %48, %cst_44 {dimension_numbers = #tpu.dot_dimension_numbers<[1], [0], [0], [1], [0, 0, 1, 1], [], []>} : vector<64x128xbf16>, vector<128x128xbf16>, vector<64x128xf32> -> vector<64x128xf32>
    %50 = arith.addf %40, %49 : vector<64x128xf32>
    %c0_45 = arith.constant 0 : index
    %c0_46 = arith.constant 0 : index
    %c1_47 = arith.constant 1 : index
    %c2_48 = arith.constant 2 : index
    %c0_49 = arith.constant 0 : index
    %51 = vector.load %arg1[%c0_45, %c0_46, %c1_47, %c2_48, %c0_49] : memref<1x1x10x10x128xf32, #tpu.memory_space<vmem>>, vector<1x1x8x8x128xf32>
    %52 = vector.shape_cast %51 : vector<1x1x8x8x128xf32> to vector<8x8x128xf32>
    %cst_50 = arith.constant 0.000000e+00 : f32
    %53 = vector.broadcast %cst_50 : f32 to vector<8x8x128xf32>
    %54 = arith.maximumf %52, %53 : vector<8x8x128xf32>
    %55 = vector.shape_cast %54 : vector<8x8x128xf32> to vector<64x128xf32>
    %56 = arith.truncf %55 : vector<64x128xf32> to vector<64x128xbf16>
    %c5 = arith.constant 5 : index
    %c0_51 = arith.constant 0 : index
    %c0_52 = arith.constant 0 : index
    %57 = vector.load %arg2[%c5, %c0_51, %c0_52] : memref<9x128x128xbf16, #tpu.memory_space<vmem>>, vector<1x128x128xbf16>
    %58 = vector.shape_cast %57 : vector<1x128x128xbf16> to vector<128x128xbf16>
    %cst_53 = arith.constant dense<0.000000e+00> : vector<64x128xf32>
    %59 = tpu.matmul %56, %58, %cst_53 {dimension_numbers = #tpu.dot_dimension_numbers<[1], [0], [0], [1], [0, 0, 1, 1], [], []>} : vector<64x128xbf16>, vector<128x128xbf16>, vector<64x128xf32> -> vector<64x128xf32>
    %60 = arith.addf %50, %59 : vector<64x128xf32>
    %c0_54 = arith.constant 0 : index
    %c0_55 = arith.constant 0 : index
    %c2_56 = arith.constant 2 : index
    %c0_57 = arith.constant 0 : index
    %c0_58 = arith.constant 0 : index
    %61 = vector.load %arg1[%c0_54, %c0_55, %c2_56, %c0_57, %c0_58] : memref<1x1x10x10x128xf32, #tpu.memory_space<vmem>>, vector<1x1x8x8x128xf32>
    %62 = vector.shape_cast %61 : vector<1x1x8x8x128xf32> to vector<8x8x128xf32>
    %cst_59 = arith.constant 0.000000e+00 : f32
    %63 = vector.broadcast %cst_59 : f32 to vector<8x8x128xf32>
    %64 = arith.maximumf %62, %63 : vector<8x8x128xf32>
    %65 = vector.shape_cast %64 : vector<8x8x128xf32> to vector<64x128xf32>
    %66 = arith.truncf %65 : vector<64x128xf32> to vector<64x128xbf16>
    %c6 = arith.constant 6 : index
    %c0_60 = arith.constant 0 : index
    %c0_61 = arith.constant 0 : index
    %67 = vector.load %arg2[%c6, %c0_60, %c0_61] : memref<9x128x128xbf16, #tpu.memory_space<vmem>>, vector<1x128x128xbf16>
    %68 = vector.shape_cast %67 : vector<1x128x128xbf16> to vector<128x128xbf16>
    %cst_62 = arith.constant dense<0.000000e+00> : vector<64x128xf32>
    %69 = tpu.matmul %66, %68, %cst_62 {dimension_numbers = #tpu.dot_dimension_numbers<[1], [0], [0], [1], [0, 0, 1, 1], [], []>} : vector<64x128xbf16>, vector<128x128xbf16>, vector<64x128xf32> -> vector<64x128xf32>
    %70 = arith.addf %60, %69 : vector<64x128xf32>
    %c0_63 = arith.constant 0 : index
    %c0_64 = arith.constant 0 : index
    %c2_65 = arith.constant 2 : index
    %c1_66 = arith.constant 1 : index
    %c0_67 = arith.constant 0 : index
    %71 = vector.load %arg1[%c0_63, %c0_64, %c2_65, %c1_66, %c0_67] : memref<1x1x10x10x128xf32, #tpu.memory_space<vmem>>, vector<1x1x8x8x128xf32>
    %72 = vector.shape_cast %71 : vector<1x1x8x8x128xf32> to vector<8x8x128xf32>
    %cst_68 = arith.constant 0.000000e+00 : f32
    %73 = vector.broadcast %cst_68 : f32 to vector<8x8x128xf32>
    %74 = arith.maximumf %72, %73 : vector<8x8x128xf32>
    %75 = vector.shape_cast %74 : vector<8x8x128xf32> to vector<64x128xf32>
    %76 = arith.truncf %75 : vector<64x128xf32> to vector<64x128xbf16>
    %c7 = arith.constant 7 : index
    %c0_69 = arith.constant 0 : index
    %c0_70 = arith.constant 0 : index
    %77 = vector.load %arg2[%c7, %c0_69, %c0_70] : memref<9x128x128xbf16, #tpu.memory_space<vmem>>, vector<1x128x128xbf16>
    %78 = vector.shape_cast %77 : vector<1x128x128xbf16> to vector<128x128xbf16>
    %cst_71 = arith.constant dense<0.000000e+00> : vector<64x128xf32>
    %79 = tpu.matmul %76, %78, %cst_71 {dimension_numbers = #tpu.dot_dimension_numbers<[1], [0], [0], [1], [0, 0, 1, 1], [], []>} : vector<64x128xbf16>, vector<128x128xbf16>, vector<64x128xf32> -> vector<64x128xf32>
    %80 = arith.addf %70, %79 : vector<64x128xf32>
    %c0_72 = arith.constant 0 : index
    %c0_73 = arith.constant 0 : index
    %c2_74 = arith.constant 2 : index
    %c2_75 = arith.constant 2 : index
    %c0_76 = arith.constant 0 : index
    %81 = vector.load %arg1[%c0_72, %c0_73, %c2_74, %c2_75, %c0_76] : memref<1x1x10x10x128xf32, #tpu.memory_space<vmem>>, vector<1x1x8x8x128xf32>
    %82 = vector.shape_cast %81 : vector<1x1x8x8x128xf32> to vector<8x8x128xf32>
    %cst_77 = arith.constant 0.000000e+00 : f32
    %83 = vector.broadcast %cst_77 : f32 to vector<8x8x128xf32>
    %84 = arith.maximumf %82, %83 : vector<8x8x128xf32>
    %85 = vector.shape_cast %84 : vector<8x8x128xf32> to vector<64x128xf32>
    %86 = arith.truncf %85 : vector<64x128xf32> to vector<64x128xbf16>
    %c8 = arith.constant 8 : index
    %c0_78 = arith.constant 0 : index
    %c0_79 = arith.constant 0 : index
    %87 = vector.load %arg2[%c8, %c0_78, %c0_79] : memref<9x128x128xbf16, #tpu.memory_space<vmem>>, vector<1x128x128xbf16>
    %88 = vector.shape_cast %87 : vector<1x128x128xbf16> to vector<128x128xbf16>
    %cst_80 = arith.constant dense<0.000000e+00> : vector<64x128xf32>
    %89 = tpu.matmul %86, %88, %cst_80 {dimension_numbers = #tpu.dot_dimension_numbers<[1], [0], [0], [1], [0, 0, 1, 1], [], []>} : vector<64x128xbf16>, vector<128x128xbf16>, vector<64x128xf32> -> vector<64x128xf32>
    %90 = arith.addf %80, %89 : vector<64x128xf32>
    %c0_81 = arith.constant 0 : index
    %c0_82 = arith.constant 0 : index
    %91 = vector.load %arg3[%c0_81, %c0_82] : memref<64x128xf32, #tpu.memory_space<vmem>>, vector<64x128xf32>
    tpu.vector_store %arg3[%c0_81, %c0_82], %90 {strides = array<i32>} : memref<64x128xf32, #tpu.memory_space<vmem>>, vector<64x128xf32>,
    %c0_i32 = arith.constant 0 : i32
    %92 = arith.cmpi eq, %arg0, %c0_i32 : i32
    %93 = arith.extui %92 : i1 to i32
    %c0_i32_83 = arith.constant 0 : i32
    %94 = arith.cmpi ne, %93, %c0_i32_83 : i32
    scf.if %94 {
      %cst_94 = arith.constant 0.000000e+00 : f32
      %106 = vector.broadcast %cst_94 : f32 to vector<1x128xf32>
      %c0_95 = arith.constant 0 : index
      %c0_96 = arith.constant 0 : index
      %107 = vector.load %arg4[%c0_95, %c0_96] : memref<1x128xf32, #tpu.memory_space<vmem>>, vector<1x128xf32>
      tpu.vector_store %arg4[%c0_95, %c0_96], %106 {strides = array<i32>} : memref<1x128xf32, #tpu.memory_space<vmem>>, vector<1x128xf32>,
      %cst_97 = arith.constant 0.000000e+00 : f32
      %108 = vector.broadcast %cst_97 : f32 to vector<1x128xf32>
      %c0_98 = arith.constant 0 : index
      %c0_99 = arith.constant 0 : index
      %109 = vector.load %arg5[%c0_98, %c0_99] : memref<1x128xf32, #tpu.memory_space<vmem>>, vector<1x128xf32>
      tpu.vector_store %arg5[%c0_98, %c0_99], %108 {strides = array<i32>} : memref<1x128xf32, #tpu.memory_space<vmem>>, vector<1x128xf32>,
    } else {
    }
    %c0_84 = arith.constant 0 : index
    %c0_85 = arith.constant 0 : index
    %95 = vector.load %arg4[%c0_84, %c0_85] : memref<1x128xf32, #tpu.memory_space<vmem>>, vector<1x128xf32>
    %cst_86 = arith.constant dense<0.000000e+00> : vector<128xf32>
    %96 = vector.multi_reduction <add>, %90, %cst_86 [0] : vector<64x128xf32> to vector<128xf32>
    %97 = vector.shape_cast %96 : vector<128xf32> to vector<1x128xf32>
    %98 = arith.addf %95, %97 : vector<1x128xf32>
    %c0_87 = arith.constant 0 : index
    %c0_88 = arith.constant 0 : index
    %99 = vector.load %arg4[%c0_87, %c0_88] : memref<1x128xf32, #tpu.memory_space<vmem>>, vector<1x128xf32>
    tpu.vector_store %arg4[%c0_87, %c0_88], %98 {strides = array<i32>} : memref<1x128xf32, #tpu.memory_space<vmem>>, vector<1x128xf32>,
    %c0_89 = arith.constant 0 : index
    %c0_90 = arith.constant 0 : index
    %100 = vector.load %arg5[%c0_89, %c0_90] : memref<1x128xf32, #tpu.memory_space<vmem>>, vector<1x128xf32>
    %101 = arith.mulf %90, %90 : vector<64x128xf32>
    %cst_91 = arith.constant dense<0.000000e+00> : vector<128xf32>
    %102 = vector.multi_reduction <add>, %101, %cst_91 [0] : vector<64x128xf32> to vector<128xf32>
    %103 = vector.shape_cast %102 : vector<128xf32> to vector<1x128xf32>
    %104 = arith.addf %100, %103 : vector<1x128xf32>
    %c0_92 = arith.constant 0 : index
    %c0_93 = arith.constant 0 : index
    %105 = vector.load %arg5[%c0_92, %c0_93] : memref<1x128xf32, #tpu.memory_space<vmem>>, vector<1x128xf32>
    tpu.vector_store %arg5[%c0_92, %c0_93], %104 {strides = array<i32>} : memref<1x128xf32, #tpu.memory_space<vmem>>, vector<1x128xf32>,
    return
  }
  func.func @transform_0(%arg0: i32) -> (i32, i32, i32, i32, i32) {
    %c0_i32 = arith.constant 0 : i32
    %c0_i32_0 = arith.constant 0 : i32
    %c0_i32_1 = arith.constant 0 : i32
    %c0_i32_2 = arith.constant 0 : i32
    %c0_i32_3 = arith.constant 0 : i32
    return %arg0, %c0_i32, %c0_i32_0, %c0_i32_1, %c0_i32_2 : i32, i32, i32, i32, i32
  }
  func.func @transform_1(%arg0: i32) -> (i32, i32, i32) {
    %c0_i32 = arith.constant 0 : i32
    %c0_i32_0 = arith.constant 0 : i32
    %c0_i32_1 = arith.constant 0 : i32
    %c0_i32_2 = arith.constant 0 : i32
    return %c0_i32, %c0_i32_0, %c0_i32_1 : i32, i32, i32
  }
  func.func @transform_2(%arg0: i32) -> (i32, i32) {
    %c0_i32 = arith.constant 0 : i32
    %c0_i32_0 = arith.constant 0 : i32
    return %arg0, %c0_i32 : i32, i32
  }
  func.func @transform_3(%arg0: i32) -> (i32, i32) {
    %c0_i32 = arith.constant 0 : i32
    %c0_i32_0 = arith.constant 0 : i32
    %c0_i32_1 = arith.constant 0 : i32
    return %c0_i32, %c0_i32_0 : i32, i32
  }
  func.func @transform_4(%arg0: i32) -> (i32, i32) {
    %c0_i32 = arith.constant 0 : i32
    %c0_i32_0 = arith.constant 0 : i32
    %c0_i32_1 = arith.constant 0 : i32
    return %c0_i32, %c0_i32_0 : i32, i32
  }
}

module attributes {stable_mosaic.version = 11 : i64} {
  func.func @_conv_taps_kernel(%arg0: i32, %arg1: memref<1x4x8x8x4xf32, #tpu.memory_space<vmem>>, %arg2: memref<4x4x128xbf16, #tpu.memory_space<vmem>>, %arg3: memref<64x128xf32, #tpu.memory_space<vmem>>) attributes {dimension_semantics = [#tpu.dimension_semantics<parallel>], iteration_bounds = array<i64: 2>, scalar_prefetch = 0 : i64, scratch_operands = 0 : i64, tpu.core_type = #tpu.core_type<tc>, window_params = [{transform_indices = @transform_0, window_bounds = array<i64: 1, 4, 8, 8, 4>}, {pipeline_mode = #tpu.pipeline_mode<synchronous>, transform_indices = @transform_1, window_bounds = array<i64: 4, 4, 128>}, {transform_indices = @transform_2, window_bounds = array<i64: 64, 128>}]} {
    %cst = arith.constant 0.000000e+00 : f32
    %0 = vector.broadcast %cst : f32 to vector<64x128xf32>
    %c0 = arith.constant 0 : index
    %c0_0 = arith.constant 0 : index
    %c0_1 = arith.constant 0 : index
    %c0_2 = arith.constant 0 : index
    %c0_3 = arith.constant 0 : index
    %1 = vector.load %arg1[%c0, %c0_0, %c0_1, %c0_2, %c0_3] : memref<1x4x8x8x4xf32, #tpu.memory_space<vmem>>, vector<1x1x8x8x4xf32>
    %2 = vector.shape_cast %1 : vector<1x1x8x8x4xf32> to vector<8x8x4xf32>
    %3 = vector.shape_cast %2 : vector<8x8x4xf32> to vector<64x4xf32>
    %4 = arith.truncf %3 : vector<64x4xf32> to vector<64x4xbf16>
    %c0_4 = arith.constant 0 : index
    %c0_5 = arith.constant 0 : index
    %c0_6 = arith.constant 0 : index
    %5 = vector.load %arg2[%c0_4, %c0_5, %c0_6] : memref<4x4x128xbf16, #tpu.memory_space<vmem>>, vector<1x4x128xbf16>
    %6 = vector.shape_cast %5 : vector<1x4x128xbf16> to vector<4x128xbf16>
    %cst_7 = arith.constant dense<0.000000e+00> : vector<64x128xf32>
    %7 = tpu.matmul %4, %6, %cst_7 {dimension_numbers = #tpu.dot_dimension_numbers<[1], [0], [0], [1], [0, 0, 1, 1], [], []>} : vector<64x4xbf16>, vector<4x128xbf16>, vector<64x128xf32> -> vector<64x128xf32>
    %8 = arith.addf %0, %7 : vector<64x128xf32>
    %c0_8 = arith.constant 0 : index
    %c1 = arith.constant 1 : index
    %c0_9 = arith.constant 0 : index
    %c0_10 = arith.constant 0 : index
    %c0_11 = arith.constant 0 : index
    %9 = vector.load %arg1[%c0_8, %c1, %c0_9, %c0_10, %c0_11] : memref<1x4x8x8x4xf32, #tpu.memory_space<vmem>>, vector<1x1x8x8x4xf32>
    %10 = vector.shape_cast %9 : vector<1x1x8x8x4xf32> to vector<8x8x4xf32>
    %11 = vector.shape_cast %10 : vector<8x8x4xf32> to vector<64x4xf32>
    %12 = arith.truncf %11 : vector<64x4xf32> to vector<64x4xbf16>
    %c1_12 = arith.constant 1 : index
    %c0_13 = arith.constant 0 : index
    %c0_14 = arith.constant 0 : index
    %13 = vector.load %arg2[%c1_12, %c0_13, %c0_14] : memref<4x4x128xbf16, #tpu.memory_space<vmem>>, vector<1x4x128xbf16>
    %14 = vector.shape_cast %13 : vector<1x4x128xbf16> to vector<4x128xbf16>
    %cst_15 = arith.constant dense<0.000000e+00> : vector<64x128xf32>
    %15 = tpu.matmul %12, %14, %cst_15 {dimension_numbers = #tpu.dot_dimension_numbers<[1], [0], [0], [1], [0, 0, 1, 1], [], []>} : vector<64x4xbf16>, vector<4x128xbf16>, vector<64x128xf32> -> vector<64x128xf32>
    %16 = arith.addf %8, %15 : vector<64x128xf32>
    %c0_16 = arith.constant 0 : index
    %c2 = arith.constant 2 : index
    %c0_17 = arith.constant 0 : index
    %c0_18 = arith.constant 0 : index
    %c0_19 = arith.constant 0 : index
    %17 = vector.load %arg1[%c0_16, %c2, %c0_17, %c0_18, %c0_19] : memref<1x4x8x8x4xf32, #tpu.memory_space<vmem>>, vector<1x1x8x8x4xf32>
    %18 = vector.shape_cast %17 : vector<1x1x8x8x4xf32> to vector<8x8x4xf32>
    %19 = vector.shape_cast %18 : vector<8x8x4xf32> to vector<64x4xf32>
    %20 = arith.truncf %19 : vector<64x4xf32> to vector<64x4xbf16>
    %c2_20 = arith.constant 2 : index
    %c0_21 = arith.constant 0 : index
    %c0_22 = arith.constant 0 : index
    %21 = vector.load %arg2[%c2_20, %c0_21, %c0_22] : memref<4x4x128xbf16, #tpu.memory_space<vmem>>, vector<1x4x128xbf16>
    %22 = vector.shape_cast %21 : vector<1x4x128xbf16> to vector<4x128xbf16>
    %cst_23 = arith.constant dense<0.000000e+00> : vector<64x128xf32>
    %23 = tpu.matmul %20, %22, %cst_23 {dimension_numbers = #tpu.dot_dimension_numbers<[1], [0], [0], [1], [0, 0, 1, 1], [], []>} : vector<64x4xbf16>, vector<4x128xbf16>, vector<64x128xf32> -> vector<64x128xf32>
    %24 = arith.addf %16, %23 : vector<64x128xf32>
    %c0_24 = arith.constant 0 : index
    %c3 = arith.constant 3 : index
    %c0_25 = arith.constant 0 : index
    %c0_26 = arith.constant 0 : index
    %c0_27 = arith.constant 0 : index
    %25 = vector.load %arg1[%c0_24, %c3, %c0_25, %c0_26, %c0_27] : memref<1x4x8x8x4xf32, #tpu.memory_space<vmem>>, vector<1x1x8x8x4xf32>
    %26 = vector.shape_cast %25 : vector<1x1x8x8x4xf32> to vector<8x8x4xf32>
    %27 = vector.shape_cast %26 : vector<8x8x4xf32> to vector<64x4xf32>
    %28 = arith.truncf %27 : vector<64x4xf32> to vector<64x4xbf16>
    %c3_28 = arith.constant 3 : index
    %c0_29 = arith.constant 0 : index
    %c0_30 = arith.constant 0 : index
    %29 = vector.load %arg2[%c3_28, %c0_29, %c0_30] : memref<4x4x128xbf16, #tpu.memory_space<vmem>>, vector<1x4x128xbf16>
    %30 = vector.shape_cast %29 : vector<1x4x128xbf16> to vector<4x128xbf16>
    %cst_31 = arith.constant dense<0.000000e+00> : vector<64x128xf32>
    %31 = tpu.matmul %28, %30, %cst_31 {dimension_numbers = #tpu.dot_dimension_numbers<[1], [0], [0], [1], [0, 0, 1, 1], [], []>} : vector<64x4xbf16>, vector<4x128xbf16>, vector<64x128xf32> -> vector<64x128xf32>
    %32 = arith.addf %24, %31 : vector<64x128xf32>
    %c0_32 = arith.constant 0 : index
    %c0_33 = arith.constant 0 : index
    %33 = vector.load %arg3[%c0_32, %c0_33] : memref<64x128xf32, #tpu.memory_space<vmem>>, vector<64x128xf32>
    tpu.vector_store %arg3[%c0_32, %c0_33], %32 {strides = array<i32>} : memref<64x128xf32, #tpu.memory_space<vmem>>, vector<64x128xf32>,
    return
  }
  func.func @transform_0(%arg0: i32) -> (i32, i32, i32, i32, i32) {
    %c0_i32 = arith.constant 0 : i32
    %c0_i32_0 = arith.constant 0 : i32
    %c0_i32_1 = arith.constant 0 : i32
    %c0_i32_2 = arith.constant 0 : i32
    %c0_i32_3 = arith.constant 0 : i32
    return %arg0, %c0_i32, %c0_i32_0, %c0_i32_1, %c0_i32_2 : i32, i32, i32, i32, i32
  }
  func.func @transform_1(%arg0: i32) -> (i32, i32, i32) {
    %c0_i32 = arith.constant 0 : i32
    %c0_i32_0 = arith.constant 0 : i32
    %c0_i32_1 = arith.constant 0 : i32
    %c0_i32_2 = arith.constant 0 : i32
    return %c0_i32, %c0_i32_0, %c0_i32_1 : i32, i32, i32
  }
  func.func @transform_2(%arg0: i32) -> (i32, i32) {
    %c0_i32 = arith.constant 0 : i32
    %c0_i32_0 = arith.constant 0 : i32
    return %arg0, %c0_i32 : i32, i32
  }
}

module attributes {stable_mosaic.version = 11 : i64} {
  func.func @_bn_finalize_kernel(%arg0: i32, %arg1: memref<128x128xf32, #tpu.memory_space<vmem>>, %arg2: memref<1x128xf32, #tpu.memory_space<vmem>>, %arg3: memref<1x128xf32, #tpu.memory_space<vmem>>, %arg4: memref<1x128xf32, #tpu.memory_space<vmem>>, %arg5: memref<1x128xf32, #tpu.memory_space<vmem>>, %arg6: memref<128x128xf32, #tpu.memory_space<vmem>>, %arg7: memref<128x128xf32, #tpu.memory_space<vmem>>) attributes {dimension_semantics = [#tpu.dimension_semantics<parallel>], iteration_bounds = array<i64: 1>, scalar_prefetch = 0 : i64, scratch_operands = 0 : i64, tpu.core_type = #tpu.core_type<tc>, window_params = [{transform_indices = @transform_0, window_bounds = array<i64: 128, 128>}, {pipeline_mode = #tpu.pipeline_mode<synchronous>, transform_indices = @transform_1, window_bounds = array<i64: 1, 128>}, {pipeline_mode = #tpu.pipeline_mode<synchronous>, transform_indices = @transform_2, window_bounds = array<i64: 1, 128>}, {pipeline_mode = #tpu.pipeline_mode<synchronous>, transform_indices = @transform_3, window_bounds = array<i64: 1, 128>}, {pipeline_mode = #tpu.pipeline_mode<synchronous>, transform_indices = @transform_4, window_bounds = array<i64: 1, 128>}, {transform_indices = @transform_5, window_bounds = array<i64: 128, 128>}, {transform_indices = @transform_6, window_bounds = array<i64: 128, 128>}]} {
    %c0 = arith.constant 0 : index
    %c0_0 = arith.constant 0 : index
    %0 = vector.load %arg2[%c0, %c0_0] : memref<1x128xf32, #tpu.memory_space<vmem>>, vector<1x128xf32>
    %cst = arith.constant 7.812500e-03 : f32
    %1 = vector.broadcast %cst : f32 to vector<1x128xf32>
    %2 = arith.mulf %0, %1 : vector<1x128xf32>
    %c0_1 = arith.constant 0 : index
    %c0_2 = arith.constant 0 : index
    %3 = vector.load %arg3[%c0_1, %c0_2] : memref<1x128xf32, #tpu.memory_space<vmem>>, vector<1x128xf32>
    %cst_3 = arith.constant 7.812500e-03 : f32
    %4 = vector.broadcast %cst_3 : f32 to vector<1x128xf32>
    %5 = arith.mulf %3, %4 : vector<1x128xf32>
    %6 = arith.mulf %2, %2 : vector<1x128xf32>
    %7 = arith.subf %5, %6 : vector<1x128xf32>
    %c0_4 = arith.constant 0 : index
    %c0_5 = arith.constant 0 : index
    %8 = vector.load %arg4[%c0_4, %c0_5] : memref<1x128xf32, #tpu.memory_space<vmem>>, vector<1x128xf32>
    %cst_6 = arith.constant 9.99999974E-6 : f32
    %9 = vector.broadcast %cst_6 : f32 to vector<1x128xf32>
    %10 = arith.addf %7, %9 : vector<1x128xf32>
    %11 = math.rsqrt %10 : vector<1x128xf32>
    %12 = arith.mulf %8, %11 : vector<1x128xf32>
    %c0_7 = arith.constant 0 : index
    %c0_8 = arith.constant 0 : index
    %13 = vector.load %arg5[%c0_7, %c0_8] : memref<1x128xf32, #tpu.memory_space<vmem>>, vector<1x128xf32>
    %14 = arith.mulf %2, %12 : vector<1x128xf32>
    %15 = arith.subf %13, %14 : vector<1x128xf32>
    %c0_9 = arith.constant 0 : index
    %c0_10 = arith.constant 0 : index
    %16 = vector.load %arg1[%c0_9, %c0_10] : memref<128x128xf32, #tpu.memory_space<vmem>>, vector<128x128xf32>
    %17 = vector.broadcast %12 : vector<1x128xf32> to vector<128x128xf32>
    %18 = arith.mulf %16, %17 : vector<128x128xf32>
    %19 = vector.broadcast %15 : vector<1x128xf32> to vector<128x128xf32>
    %20 = arith.addf %18, %19 : vector<128x128xf32>
    %c0_11 = arith.constant 0 : index
    %c0_12 = arith.constant 0 : index
    %21 = vector.load %arg6[%c0_11, %c0_12] : memref<128x128xf32, #tpu.memory_space<vmem>>, vector<128x128xf32>
    %22 = arith.addf %20, %21 : vector<128x128xf32>
    %c0_13 = arith.constant 0 : index
    %c0_14 = arith.constant 0 : index
    %23 = vector.load %arg7[%c0_13, %c0_14] : memref<128x128xf32, #tpu.memory_space<vmem>>, vector<128x128xf32>
    tpu.vector_store %arg7[%c0_13, %c0_14], %22 {strides = array<i32>} : memref<128x128xf32, #tpu.memory_space<vmem>>, vector<128x128xf32>,
    return
  }
  func.func @transform_0(%arg0: i32) -> (i32, i32) {
    %c0_i32 = arith.constant 0 : i32
    %c0_i32_0 = arith.constant 0 : i32
    return %arg0, %c0_i32 : i32, i32
  }
  func.func @transform_1(%arg0: i32) -> (i32, i32) {
    %c0_i32 = arith.constant 0 : i32
    %c0_i32_0 = arith.constant 0 : i32
    %c0_i32_1 = arith.constant 0 : i32
    return %c0_i32, %c0_i32_0 : i32, i32
  }
  func.func @transform_2(%arg0: i32) -> (i32, i32) {
    %c0_i32 = arith.constant 0 : i32
    %c0_i32_0 = arith.constant 0 : i32
    %c0_i32_1 = arith.constant 0 : i32
    return %c0_i32, %c0_i32_0 : i32, i32
  }
  func.func @transform_3(%arg0: i32) -> (i32, i32) {
    %c0_i32 = arith.constant 0 : i32
    %c0_i32_0 = arith.constant 0 : i32
    %c0_i32_1 = arith.constant 0 : i32
    return %c0_i32, %c0_i32_0 : i32, i32
  }
  func.func @transform_4(%arg0: i32) -> (i32, i32) {
    %c0_i32 = arith.constant 0 : i32
    %c0_i32_0 = arith.constant 0 : i32
    %c0_i32_1 = arith.constant 0 : i32
    return %c0_i32, %c0_i32_0 : i32, i32
  }
  func.func @transform_5(%arg0: i32) -> (i32, i32) {
    %c0_i32 = arith.constant 0 : i32
    %c0_i32_0 = arith.constant 0 : i32
    return %arg0, %c0_i32 : i32, i32
  }
  func.func @transform_6(%arg0: i32) -> (i32, i32) {
    %c0_i32 = arith.constant 0 : i32
    %c0_i32_0 = arith.constant 0 : i32
    return %arg0, %c0_i32 : i32, i32
  }
}

</mosaic_0001>

<bundles_post_ra>
// kernel: resnet_basicblock.6
= control target key start
LH: loop header
LB: loop body
LE: loop exit
PB: predicated region body
PF: predicated region fallthrough
CT: control target
= control target key end

     0   :  { %v50_v7 = vlaneseq  ;;  %s253_s1 = inlined_call_operand.vmem [shape: f32[1,128], index: 1, kind: input, shape index: {}]   ;;  %s254_s2 = inlined_call_operand.vmem [shape: f32[1,128], index: 2, kind: input, shape index: {}]   ;;  %s255_s3 = inlined_call_operand.vmem [shape: f32[1,128], index: 3, kind: input, shape index: {}]   ;;  %s256_s0 = inlined_call_operand.vmem [shape: f32[128,128], index: 0, kind: input, shape index: {}]   ;;  %s257_s4 = inlined_call_operand.vmem [shape: f32[1,128], index: 4, kind: input, shape index: {}]   ;;  %s258_s5 = inlined_call_operand.vmem [shape: f32[128,128], index: 5, kind: output, shape index: {}]  }
   0x1   :  { %v20_v0 = vld [vmem:[%s253_s1] sm:$0x1]  ;;  %v34_v15 = vld [vmem:[%s256_s0 + $0x8] sm:$0xff]  ;;  %v35_v16 = vld [vmem:[%s256_s0 + $0x10] sm:$0xff] }
   0x2   :  { %v22_v1 = vld [vmem:[%s254_s2] sm:$0x1]  ;;  %v21_v2 = vmul.f32 0.0078125, %v20_v0  ;;  %v51_v8 = vshrl.u32 %v50_v7, 7  ;;  %v36_v17 = vld [vmem:[%s256_s0 + $0x18] sm:$0xff]  ;;  %v38_v21 = vld [vmem:[%s256_s0 + $0x28] sm:$0xff] }
   0x3   :  { %v23_v3 = vmul.f32 0.0078125, %v22_v1  ;;  %v26_v9 = vld [vmem:[%s255_s3] sm:$0x1]  ;;  %v39_v22 = vld [vmem:[%s256_s0 + $0x30] sm:$0xff]  ;;  %v40_v23 = vld [vmem:[%s256_s0 + $0x38] sm:$0xff] }
   0x4   :  { %v24_v4 = vmul.f32 %v21_v2, %v21_v2  ;;  %v52_v10 = vsub.s32 0, %v51_v8  ;;  %v30_v13 = vld [vmem:[%s257_s4] sm:$0x1]  ;;  %v42_v25 = vld [vmem:[%s256_s0 + $0x48] sm:$0xff]  ;;  %v43_v26 = vld [vmem:[%s256_s0 + $0x50] sm:$0xff] }
   0x5   :  { %v33_v14 = vld [vmem:[%s256_s0] sm:$0xff]  ;;  %v44_v31 = vld [vmem:[%s256_s0 + $0x58] sm:$0xff]  ;;  %v46_v33 = vld [vmem:[%s256_s0 + $0x68] sm:$0xff] }
   0x6   :  { %v25_v5 = vsub.f32 %v23_v3, %v24_v4  ;;  %v37_v18 = vld [vmem:[%s256_s0 + $0x20] sm:$0xff]  ;;  %v47_v50 = vld [vmem:[%s256_s0 + $0x70] sm:$0xff]  ;;  %v48_v51 = vld [vmem:[%s256_s0 + $0x78] sm:$0xff] }
   0x7   :  { %v41_v24 = vld [vmem:[%s256_s0 + $0x40] sm:$0xff] }
   0x8   :  { %v27_v6 = vadd.f32 1e-05, %v25_v5  ;;  %v45_v32 = vld [vmem:[%s256_s0 + $0x60] sm:$0xff] }
   0xa   :  { %113 = vrsqrt.f32 %v27_v6 }
  0x14   :  { %v114_v11 = vpop.eup %113 }
  0x15   :  { %v29_v12 = vmul.f32 %v114_v11, %v26_v9 }
  0x17   :  { %v31_v19 = vmul.f32 %v29_v12, %v21_v2  ;;  %v53_v20 = vrot.slane %v29_v12, %v52_v10 }
  0x19   :  { %v32_v27 = vsub.f32 %v30_v13, %v31_v19  ;;  %v55_v28 = vmul.f32 %v53_v20, %v33_v14  ;;  %v56_v29 = vmul.f32 %v53_v20, %v34_v15  ;;  %v57_v30 = vmul.f32 %v53_v20, %v35_v16 }
  0x1a   :  { %v58_v34 = vmul.f32 %v53_v20, %v36_v17  ;;  %v59_v35 = vmul.f32 %v53_v20, %v37_v18  ;;  %v60_v36 = vmul.f32 %v53_v20, %v38_v21  ;;  %v61_v37 = vmul.f32 %v53_v20, %v39_v22 }
  0x1b   :  { %v75_v38 = vrot.slane %v32_v27, %v52_v10  ;;  %v62_v39 = vmul.f32 %v53_v20, %v40_v23  ;;  %v63_v40 = vmul.f32 %v53_v20, %v41_v24  ;;  %v64_v41 = vmul.f32 %v53_v20, %v42_v25 }
  0x1c   :  { %v65_v42 = vmul.f32 %v53_v20, %v43_v26  ;;  %v66_v43 = vmul.f32 %v53_v20, %v44_v31  ;;  %v67_v44 = vmul.f32 %v53_v20, %v45_v32  ;;  %v68_v45 = vmul.f32 %v53_v20, %v46_v33 }
  0x1d   :  { %v77_v46 = vadd.f32 %v75_v38, %v55_v28  ;;  %v78_v47 = vadd.f32 %v75_v38, %v56_v29  ;;  %v79_v48 = vadd.f32 %v75_v38, %v57_v30  ;;  %v80_v49 = vadd.f32 %v75_v38, %v58_v34 }
  0x1e   :  { %v81_v52 = vadd.f32 %v75_v38, %v59_v35  ;;  %v82_v53 = vadd.f32 %v75_v38, %v60_v36  ;;  %v83_v54 = vadd.f32 %v75_v38, %v61_v37  ;;  %v84_v55 = vadd.f32 %v75_v38, %v62_v39 }
  0x1f   :  { %93 = vst [vmem:[%s258_s5] sm:$0xff] %v77_v46  ;;  %94 = vst [vmem:[%s258_s5 + $0x8] sm:$0xff] %v78_v47  ;;  %v85_v56 = vadd.f32 %v75_v38, %v63_v40  ;;  %v86_v57 = vadd.f32 %v75_v38, %v64_v41  ;;  %v87_v58 = vadd.f32 %v75_v38, %v65_v42 }
  0x20   :  { %95 = vst [vmem:[%s258_s5 + $0x10] sm:$0xff] %v79_v48  ;;  %96 = vst [vmem:[%s258_s5 + $0x18] sm:$0xff] %v80_v49  ;;  %v88_v59 = vadd.f32 %v75_v38, %v66_v43  ;;  %v89_v60 = vadd.f32 %v75_v38, %v67_v44  ;;  %v90_v61 = vadd.f32 %v75_v38, %v68_v45 }
  0x21   :  { %97 = vst [vmem:[%s258_s5 + $0x20] sm:$0xff] %v81_v52  ;;  %98 = vst [vmem:[%s258_s5 + $0x28] sm:$0xff] %v82_v53  ;;  %v69_v62 = vmul.f32 %v53_v20, %v47_v50  ;;  %v70_v63 = vmul.f32 %v53_v20, %v48_v51 }
  0x22   :  { %99 = vst [vmem:[%s258_s5 + $0x30] sm:$0xff] %v83_v54  ;;  %100 = vst [vmem:[%s258_s5 + $0x38] sm:$0xff] %v84_v55 }
  0x23   :  { %101 = vst [vmem:[%s258_s5 + $0x40] sm:$0xff] %v85_v56  ;;  %102 = vst [vmem:[%s258_s5 + $0x48] sm:$0xff] %v86_v57  ;;  %v91_v0 = vadd.f32 %v75_v38, %v69_v62  ;;  %v92_v1 = vadd.f32 %v75_v38, %v70_v63 }
  0x24   :  { %103 = vst [vmem:[%s258_s5 + $0x50] sm:$0xff] %v87_v58  ;;  %104 = vst [vmem:[%s258_s5 + $0x58] sm:$0xff] %v88_v59 }
  0x25   :  { %105 = vst [vmem:[%s258_s5 + $0x60] sm:$0xff] %v89_v60  ;;  %106 = vst [vmem:[%s258_s5 + $0x68] sm:$0xff] %v90_v61 }
  0x26   :  { %107 = vst [vmem:[%s258_s5 + $0x70] sm:$0xff] %v91_v0  ;;  %108 = vst [vmem:[%s258_s5 + $0x78] sm:$0xff] %v92_v1 }

// kernel: resnet_basicblock.5
= control target key start
LH: loop header
LB: loop body
LE: loop exit
PB: predicated region body
PF: predicated region fallthrough
CT: control target
= control target key end

     0   :  { %s1663_s15 = smov 0   ;;  %s1941_s0 = inlined_call_operand.vmem [shape: f32[2,4,9,9,4], index: 0, kind: input, shape index: {}]   ;;  %s1942_s1 = inlined_call_operand.vmem [shape: bf16[9,4,128], index: 1, kind: input, shape index: {}]   ;;  %s1943_s2 = inlined_call_operand.vmem [shape: f32[128,128], index: 2, kind: output, shape index: {0}]   ;;  %s1944_s3 = inlined_call_operand.vmem [shape: f32[1,128], index: 3, kind: output, shape index: {1}]   ;;  %s1945_s4 = inlined_call_operand.vmem [shape: f32[1,128], index: 4, kind: output, shape index: {2}]  }
   0x1 LB: > { %s1669_s16 = sadd.s32 4294967295, %s1635_s15   ;;  %p1301_p0 = scmp.ge.s32.totalorder %s1635_s15, 1  ;;  %s1635_s15 = sphi %s1663_s15, %s15_s15  }
   0x2   : > { %p157_p1 = scmp.lt.s32.totalorder %s1635_s15, 3 }
   0x4   : > { %p158_p2 = pnand %p1301_p0, %p157_p1 }
   0x5   : > { %v1313_v0 = vld [vmem:[%s1942_s1 + $0x2] sm:$0x3] (!%p158_p2)  ;;  %vm252_vm0 = vcmask (!%p158_p2), 1041408   ;;  %v1679_v1 = vld [vmem:[%s1942_s1 + $0x8] sm:$0x3] (!%p158_p2)  ;;  %p183_p3 = scmp.lt.s32.totalorder (!%p158_p2), %s1669_s16, 1 }
   0x6   : > { %161 = sbr.rel (%p158_p2) target bundleno = 343 (0x157), region = 28  ;;  %1609 = vmatprep.subr.msk.bf16.mxu1 (!%p158_p2), %vm252_vm0, %v1313_v0  ;;  %1613 = vmatprep.subr.msk.bf16.mxu0 (!%p158_p2), %vm252_vm0, %v1679_v1  ;;  %v254_v2 = vsel (!%p158_p2), %vm252_vm0, %v1313_v0, 0  ;;  %v1688_v3 = vsel (!%p158_p2), %vm252_vm0, %v1679_v1, 0  ;;  %v215_v4 = vld [vmem:[%s1942_s1] sm:$0x3] (!%p158_p2)  ;;  %vm239_vm1 = vcmask (!%p158_p2), 31744  }
   0x7   : > { %1454 = vmatpush3.bf16.msra.mxu1 (!%p158_p2), %v254_v2  ;;  %1494 = vmatpush3.bf16.msra.mxu0 (!%p158_p2), %v1688_v3  ;;  %v1361_v5 = vld [vmem:[%s1942_s1 + $0xa] sm:$0x3] (!%p158_p2)  ;;  %v334_v30 = vsel (!%p158_p2), %vm252_vm0, %v215_v4, 0  ;;  %v1374_v43 = vld [vmem:[%s1942_s1 + $0xc] sm:$0x3] (!%p158_p2)  ;;  %s1303_s14 = sshll.u32 (!%p158_p2), %s1669_s16, 3 }
   0x8   : > { %1610 = vmatprep.subr.msk.bf16.mxu1 (!%p158_p2), %vm252_vm0, %v215_v4  ;;  %1615 = vmatprep.subr.msk.bf16.mxu0 (!%p158_p2), %vm252_vm0, %v1361_v5  ;;  %v768_v35 = vsel (!%p158_p2), %vm252_vm0, %v1361_v5, 0  ;;  %v1322_v47 = vld [vmem:[%s1942_s1 + $0x4] sm:$0x3] (!%p158_p2)  ;;  %p189_p4 = scmp.lt.s32.totalorder (!%p158_p2), %s1303_s14, 15  ;;  %p1405_p5 = scmp.ne.s32.totalorder (!%p158_p2), %s1669_s16, 0 }
   0xd   : > { %s184_s23 = scalar_select %p183_p3, %s1669_s16, 1 }
   0xe   : > { %s1947_s14 = smov (!%p189_p4, %s1303_s14), 15 }
   0xf   : > { %s1619_s26 = smul.u32 576, %s184_s23  ;;  %s1304_s17 = sshll.u32 %s1947_s14, 3 }
  0x10   : > { %s192_s20 = scalar_lea.vmem %s1943_s2, %s1304_s17 }
  0x11   : > { %s1703_s29 = scalar_lea.vmem %s1941_s0, %s1619_s26 }
  0x12   : > { %v1305_v6 = vld [vmem:[%s1703_s29 + $0x90] sm:$0xff]  ;;  %v1707_v7 = vld [vmem:[%s1703_s29 + $0xa0] sm:$0xff] }
  0x13   : > { %v1340_v8 = vld [vmem:[%s1703_s29 + $0x1b0] sm:$0xff]  ;;  %v225_v9 = vmax.f32 %v1305_v6, 0.0  ;;  %v226_v10 = vmax.f32 %v1707_v7, 0.0  ;;  %v1341_v11 = vld [vmem:[%s1703_s29 + $0x1c0] sm:$0xff] }
  0x14   : > { %v631_v12 = vmax.f32 %v1340_v8, 0.0  ;;  %v1713_v13 = vld [vmem:[%s1703_s29 + $0xb0] sm:$0xff]  ;;  %v1716_v14 = vld [vmem:[%s1703_s29 + $0xc0] sm:$0xff]  ;;  %v632_v15 = vmax.f32 %v1341_v11, 0.0 }
  0x15   : > { %v227_v16 = vmax.f32 %v1713_v13, 0.0  ;;  %v228_v17 = vmax.f32 %v1716_v14, 0.0  ;;  %v1342_v18 = vld [vmem:[%s1703_s29 + $0x1d0] sm:$0xff]  ;;  %v1343_v19 = vld [vmem:[%s1703_s29 + $0x1e0] sm:$0xff]  ;;  %v233_v21 = vpack.c.bf16 %v226_v10, %v225_v9  ;;  %v879_v9 = vsel %vm252_vm0, %v1374_v43, 0 }
  0x16   : > { %v1723_v20 = vld [vmem:[%s1703_s29 + $0xd0] sm:$0xff]  ;;  %v633_v22 = vmax.f32 %v1342_v18, 0.0  ;;  %v634_v23 = vmax.f32 %v1343_v19, 0.0  ;;  %v1728_v24 = vld [vmem:[%s1703_s29 + $0xe0] sm:$0xff]  ;;  %v639_v28 = vpack.c.bf16 %v632_v15, %v631_v12  ;;  %v1387_v12 = vld [vmem:[%s1942_s1 + $0xe] sm:$0x3] }
  0x17   : > { %v229_v25 = vmax.f32 %v1723_v20, 0.0  ;;  %v1732_v26 = vld [vmem:[%s1703_s29 + $0xf0] sm:$0xff]  ;;  %v1735_v27 = vld [vmem:[%s1703_s29 + $0x100] sm:$0xff]  ;;  %v234_v29 = vpack.c.bf16 %v228_v17, %v227_v16  ;;  %v230_v31 = vmax.f32 %v1728_v24, 0.0  ;;  %1455 = vmatprep.mubr.msk.bf16.mxu1 %vm239_vm1, %v233_v21 }
  0x18   : > { %v1353_v32 = vld [vmem:[%s1703_s29 + $0x121] sm:$0xff]  ;;  %v1354_v33 = vld [vmem:[%s1703_s29 + $0x131] sm:$0xff]  ;;  %v640_v34 = vpack.c.bf16 %v634_v23, %v633_v22  ;;  %1495 = vmatprep.mubr.msk.bf16.mxu0 %vm239_vm1, %v639_v28  ;;  %v231_v41 = vmax.f32 %v1732_v26, 0.0  ;;  %v232_v42 = vmax.f32 %v1735_v27, 0.0  ;;  %v436_v23 = vsel %vm252_vm0, %v1322_v47, 0 }
  0x19   : > { %v741_v36 = vmax.f32 %v1353_v32, 0.0  ;;  %v742_v37 = vmax.f32 %v1354_v33, 0.0  ;;  %v195_v38 = vld [vmem:[%s1703_s29] sm:$0xff]  ;;  %v1749_v39 = vld [vmem:[%s1703_s29 + $0x10] sm:$0xff]  ;;  %1456 = vmatmul.mubr.msk.bf16.vlgmr.msra.gmra.mrb[0].mxu1 %vm239_vm1, %v234_v29  ;;  %v235_v40 = vpack.c.bf16 %v230_v31, %v229_v25 }
  0x1a   : > { %1464 = vmatpush3.bf16.msra.mxu1 %v334_v30  ;;  %1496 = vmatmul.mubr.msk.bf16.vlgmr.msra.gmra.mrb[0].mxu0 %vm239_vm1, %v640_v34  ;;  %v203_v45 = vmax.f32 %v195_v38, 0.0  ;;  %v204_v46 = vmax.f32 %v1749_v39, 0.0  ;;  %v1355_v48 = vld [vmem:[%s1703_s29 + $0x141] sm:$0xff]  ;;  %v1356_v49 = vld [vmem:[%s1703_s29 + $0x151] sm:$0xff]  ;;  %v236_v52 = vpack.c.bf16 %v232_v42, %v231_v41 }
  0x1b   : > { %v749_v44 = vpack.c.bf16 %v742_v37, %v741_v36  ;;  %1504 = vmatpush3.bf16.msra.mxu0 %v768_v35  ;;  %1459 = vmatprep.mubr.msk.bf16.mxu1 %vm239_vm1, %v235_v40  ;;  %v1357_v50 = vld [vmem:[%s1703_s29 + $0x161] sm:$0xff]  ;;  %v1358_v51 = vld [vmem:[%s1703_s29 + $0x171] sm:$0xff]  ;;  %v743_v53 = vmax.f32 %v1355_v48, 0.0  ;;  %v744_v54 = vmax.f32 %v1356_v49, 0.0 }
  0x1c   : > { %1616 = vmatprep.subr.msk.bf16.mxu0 %vm252_vm0, %v1374_v43  ;;  %1611 = vmatprep.subr.msk.bf16.mxu1 %vm252_vm0, %v1322_v47  ;;  %v211_v55 = vpack.c.bf16 %v204_v46, %v203_v45  ;;  %v197_v56 = vld [vmem:[%s1703_s29 + $0x20] sm:$0xff]  ;;  %v198_v57 = vld [vmem:[%s1703_s29 + $0x30] sm:$0xff]  ;;  %v745_v58 = vmax.f32 %v1357_v50, 0.0  ;;  %v746_v59 = vmax.f32 %v1358_v51, 0.0 }
  0x1d   : > { %1505 = vmatprep.mubr.msk.bf16.mxu0 %vm239_vm1, %v749_v44  ;;  %v199_v60 = vld [vmem:[%s1703_s29 + $0x40] sm:$0xff]  ;;  %v200_v61 = vld [vmem:[%s1703_s29 + $0x50] sm:$0xff]  ;;  %v205_v62 = vmax.f32 %v197_v56, 0.0  ;;  %v206_v63 = vmax.f32 %v198_v57, 0.0  ;;  %v750_v0 = vpack.c.bf16 %v744_v54, %v743_v53  ;;  %v990_v53 = vsel %vm252_vm0, %v1387_v12, 0 }
  0x1e   : > { %v207_v2 = vmax.f32 %v199_v60, 0.0  ;;  %v208_v4 = vmax.f32 %v200_v61, 0.0  ;;  %v751_v5 = vpack.c.bf16 %v746_v59, %v745_v58  ;;  %v1359_v6 = vld [vmem:[%s1703_s29 + $0x181] sm:$0xff]  ;;  %v1360_v8 = vld [vmem:[%s1703_s29 + $0x191] sm:$0xff] }
  0x1f   : > { %v212_v11 = vpack.c.bf16 %v206_v63, %v205_v62  ;;  %v747_v15 = vmax.f32 %v1359_v6, 0.0  ;;  %v748_v18 = vmax.f32 %v1360_v8, 0.0  ;;  %v201_v21 = vld [vmem:[%s1703_s29 + $0x60] sm:$0xff]  ;;  %v202_v22 = vld [vmem:[%s1703_s29 + $0x70] sm:$0xff]  ;;  %v860_v37 = vpack.c.bf16 %v205_v62, %v204_v46 }
  0x20   : > { %v213_v19 = vpack.c.bf16 %v208_v4, %v207_v2  ;;  %v401_v28 = vld [vmem:[%s1703_s29 + $0x1] sm:$0xff]  ;;  %v1798_v29 = vld [vmem:[%s1703_s29 + $0x11] sm:$0xff]  ;;  %v209_v32 = vmax.f32 %v201_v21, 0.0  ;;  %v210_v33 = vmax.f32 %v202_v22, 0.0  ;;  %v861_v48 = vpack.c.bf16 %v207_v2, %v206_v63 }
  0x21   : > { %1460 = vmatmul.mubr.msk.bf16.gmra.mrb[4].mxu1 %vm239_vm1, %v236_v52  ;;  %v1335_v30 = vld [vmem:[%s1942_s1 + $0x6] sm:$0x3]  ;;  %v752_v34 = vpack.c.bf16 %v748_v18, %v747_v15  ;;  %v409_v35 = vmax.f32 %v401_v28, 0.0  ;;  %v410_v36 = vmax.f32 %v1798_v29, 0.0  ;;  %v1815_v43 = vld [vmem:[%s1703_s29 + $0x31] sm:$0xff]  ;;  %v971_v6 = vpack.c.bf16 %v227_v16, %v226_v10 }
  0x22   : > { %1465 = vmatprep.mubr.msk.bf16.mxu1 %vm239_vm1, %v211_v55  ;;  %v214_v38 = vpack.c.bf16 %v210_v33, %v209_v32  ;;  %v1812_v40 = vld [vmem:[%s1703_s29 + $0x21] sm:$0xff]  ;;  %v1822_v45 = vld [vmem:[%s1703_s29 + $0x51] sm:$0xff]  ;;  %v412_v47 = vmax.f32 %v1815_v43, 0.0  ;;  %v862_v51 = vpack.c.bf16 %v209_v32, %v208_v4  ;;  %v547_v60 = vsel %vm252_vm0, %v1335_v30, 0 }
  0x23   : > { %v417_v39 = vpack.c.bf16 %v410_v36, %v409_v35  ;;  %v1819_v44 = vld [vmem:[%s1703_s29 + $0x41] sm:$0xff]  ;;  %v411_v46 = vmax.f32 %v1812_v40, 0.0  ;;  %v414_v50 = vmax.f32 %v1822_v45, 0.0  ;;  %v1400_v55 = vld [vmem:[%s1942_s1 + $0x10] sm:$0x3] }
  0x24   : > { %v413_v49 = vmax.f32 %v1819_v44, 0.0  ;;  %v1373_v52 = vld [vmem:[%s1703_s29 + $0x80] sm:$0xff]  ;;  %v1848_v59 = vld [vmem:[%s1703_s29 + $0x71] sm:$0xff]  ;;  %v1100_v22 = vsel %vm252_vm0, %v1400_v55, 0 }
  0x25   : > { %v418_v54 = vpack.c.bf16 %v412_v47, %v411_v46  ;;  %v859_v56 = vmax.f32 %v1373_v52, 0.0  ;;  %v1845_v58 = vld [vmem:[%s1703_s29 + $0x61] sm:$0xff]  ;;  %v1328_v62 = vld [vmem:[%s1703_s29 + $0x130] sm:$0xff] }
  0x26   : > { %1506 = vmatmul.mubr.msk.bf16.vlgmr.msra.gmra.mrb[0].mxu0 %vm239_vm1, %v750_v0  ;;  %v419_v57 = vpack.c.bf16 %v414_v50, %v413_v49  ;;  %v1327_v61 = vld [vmem:[%s1703_s29 + $0x120] sm:$0xff]  ;;  %v415_v63 = vmax.f32 %v1845_v58, 0.0  ;;  %v416_v0 = vmax.f32 %v1848_v59, 0.0  ;;  %v1332_v18 = vld [vmem:[%s1703_s29 + $0x170] sm:$0xff] }
  0x27   : > { %1514 = vmatpush3.bf16.msra.mxu0 %v879_v9  ;;  %1509 = vmatprep.mubr.msk.bf16.mxu0 %vm239_vm1, %v751_v5  ;;  %v863_v2 = vpack.c.bf16 %v859_v56, %v210_v33  ;;  %v520_v4 = vmax.f32 %v1327_v61, 0.0  ;;  %v521_v5 = vmax.f32 %v1328_v62, 0.0  ;;  %v1331_v15 = vld [vmem:[%s1703_s29 + $0x160] sm:$0xff]  ;;  %v525_v16 = vmax.f32 %v1332_v18, 0.0  ;;  %v1386_v21 = vld [vmem:[%s1703_s29 + $0x110] sm:$0xff] }
  0x28   : > { %1617 = vmatprep.subr.msk.bf16.mxu0 %vm252_vm0, %v1387_v12  ;;  %v420_v8 = vpack.c.bf16 %v416_v0, %v415_v63  ;;  %v1330_v12 = vld [vmem:[%s1703_s29 + $0x150] sm:$0xff]  ;;  %v524_v13 = vmax.f32 %v1331_v15, 0.0  ;;  %v970_v14 = vmax.f32 %v1386_v21, 0.0  ;;  %v1333_v28 = vld [vmem:[%s1703_s29 + $0x180] sm:$0xff]  ;;  %v1081_v33 = vpack.c.bf16 %v411_v46, %v410_v36 }
  0x29   : > { %1466 = vmatmul.mubr.msk.bf16.vlgmr.msra.gmra.mrb[0].mxu1 %vm239_vm1, %v212_v11  ;;  %v528_v9 = vpack.c.bf16 %v521_v5, %v520_v4  ;;  %v1329_v11 = vld [vmem:[%s1703_s29 + $0x140] sm:$0xff]  ;;  %v523_v10 = vmax.f32 %v1330_v12, 0.0  ;;  %v526_v24 = vmax.f32 %v1333_v28, 0.0  ;;  %v1346_v27 = vld [vmem:[%s1703_s29 + $0x210] sm:$0xff]  ;;  %v1083_v29 = vpack.c.bf16 %v415_v63, %v414_v50 }
  0x2a   : > { %1474 = vmatpush3.bf16.msra.mxu1 %v436_v23  ;;  %1469 = vmatprep.mubr.msk.bf16.mxu1 %vm239_vm1, %v213_v19  ;;  %v522_v7 = vmax.f32 %v1329_v11, 0.0  ;;  %v973_v19 = vpack.c.bf16 %v231_v41, %v230_v31  ;;  %v530_v20 = vpack.c.bf16 %v525_v16, %v524_v13  ;;  %v974_v31 = vpack.c.bf16 %v970_v14, %v232_v42  ;;  %v1347_v42 = vld [vmem:[%s1703_s29 + $0x220] sm:$0xff] }
  0x2b   : > { %1612 = vmatprep.subr.msk.bf16.mxu1 %vm252_vm0, %v1335_v30  ;;  %v1345_v30 = vld [vmem:[%s1703_s29 + $0x200] sm:$0xff] }
  0x2c   : > { %v529_v23 = vpack.c.bf16 %v523_v10, %v522_v7  ;;  %v636_v32 = vmax.f32 %v1345_v30, 0.0  ;;  %v1399_v36 = vld [vmem:[%s1703_s29 + $0x81] sm:$0xff] }
  0x2e   : > { %1510 = vmatmul.mubr.msk.bf16.gmra.mrb[4].mxu0 %vm239_vm1, %v752_v34 }
  0x2f   : > { %1515 = vmatprep.mubr.msk.bf16.mxu0 %vm239_vm1, %v860_v37  ;;  %v637_v37 = vmax.f32 %v1346_v27, 0.0 }
  0x31   : > { %1470 = vmatmul.mubr.msk.bf16.gmra.mrb[4].mxu1 %vm239_vm1, %v214_v38  ;;  %v638_v38 = vmax.f32 %v1347_v42, 0.0 }
  0x32   : > { %1475 = vmatprep.mubr.msk.bf16.mxu1 %vm239_vm1, %v417_v39  ;;  %v1080_v39 = vmax.f32 %v1399_v36, 0.0 }
  0x33   : > { %v642_v40 = vpack.c.bf16 %v638_v38, %v637_v37 }
  0x34   : > { %v1084_v43 = vpack.c.bf16 %v1080_v39, %v416_v0 }
  0x36   : > { %1516 = vmatmul.mubr.msk.bf16.vlgmr.msra.gmra.mrb[0].mxu0 %vm239_vm1, %v861_v48 }
  0x37   : > { %1524 = vmatpush3.bf16.msra.mxu0 %v990_v53  ;;  %1519 = vmatprep.mubr.msk.bf16.mxu0 %vm239_vm1, %v862_v51 }
  0x38   : > { %1618 = vmatprep.subr.msk.bf16.mxu0 %vm252_vm0, %v1400_v55 }
  0x39   : > { %1476 = vmatmul.mubr.msk.bf16.vlgmr.msra.gmra.mrb[0].mxu1 %vm239_vm1, %v418_v54 }
  0x3a   : > { %1484 = vmatpush3.bf16.msra.mxu1 %v547_v60  ;;  %1479 = vmatprep.mubr.msk.bf16.mxu1 %vm239_vm1, %v419_v57 }
  0x3b   : > { %1614 = vmatprep.subr.msk.bf16.mxu1 %vm252_vm0, %v1679_v1  ;;  %v972_v1 = vpack.c.bf16 %v229_v25, %v228_v17  ;;  %v1334_v17 = vld [vmem:[%s1703_s29 + $0x190] sm:$0xff] }
  0x3c   : > { %v1344_v25 = vld [vmem:[%s1703_s29 + $0x1f0] sm:$0xff]  ;;  %v527_v26 = vmax.f32 %v1334_v17, 0.0 }
  0x3d   : > { %v635_v41 = vmax.f32 %v1344_v25, 0.0 }
  0x3e   : > { %1520 = vmatmul.mubr.msk.bf16.gmra.mrb[4].mxu0 %vm239_vm1, %v863_v2  ;;  %v531_v34 = vpack.c.bf16 %v527_v26, %v526_v24 }
  0x3f   : > { %1525 = vmatprep.mubr.msk.bf16.mxu0 %vm239_vm1, %v971_v6  ;;  %v641_v35 = vpack.c.bf16 %v636_v32, %v635_v41  ;;  %v1637_v6 = vmov (!%p1405_p5), 0.0  }
  0x40   : > { %1187 = vst [vmem:[%s1944_s3] sm:$0x1] (!%p1405_p5), %v1637_v6  ;;  %1188 = vst [vmem:[%s1945_s4] sm:$0x1] (!%p1405_p5), %v1637_v6 }
  0x41   : > { %1480 = vmatmul.mubr.msk.bf16.gmra.mrb[4].mxu1 %vm239_vm1, %v420_v8 }
  0x42   : > { %1485 = vmatprep.mubr.msk.bf16.mxu1 %vm239_vm1, %v528_v9 }
  0x46   : > { %1526 = vmatmul.mubr.msk.bf16.vlgmr.msra.gmra.mrb[0].mxu0 %vm239_vm1, %v972_v1 }
  0x47   : > { %1534 = vmatpush3.bf16.msra.mxu0 %v1100_v22  ;;  %1529 = vmatprep.mubr.msk.bf16.mxu0 %vm239_vm1, %v973_v19 }
  0x49   : > { %1486 = vmatmul.mubr.msk.bf16.vlgmr.msra.gmra.mrb[0].mxu1 %vm239_vm1, %v529_v23 }
  0x4a   : > { %1544 = vmatpush3.bf16.msra.mxu1 %v1688_v3  ;;  %1489 = vmatprep.mubr.msk.bf16.mxu1 %vm239_vm1, %v530_v20  ;;  %v1082_v3 = vpack.c.bf16 %v413_v49, %v412_v47 }
  0x4e   : > { %1530 = vmatmul.mubr.msk.bf16.gmra.mrb[4].mxu0 %vm239_vm1, %v974_v31 }
  0x4f   : > { %1535 = vmatprep.mubr.msk.bf16.mxu0 %vm239_vm1, %v1081_v33 }
  0x51   : > { %1490 = vmatmul.mubr.msk.bf16.gmra.mrb[4].mxu1 %vm239_vm1, %v531_v34 }
  0x52   : > { %1499 = vmatprep.mubr.msk.bf16.mxu1 %vm239_vm1, %v641_v35 }
  0x56   : > { %1536 = vmatmul.mubr.msk.bf16.vlgmr.msra.gmra.mrb[0].mxu0 %vm239_vm1, %v1082_v3 }
  0x57   : > { %1539 = vmatprep.mubr.msk.bf16.mxu0 %vm239_vm1, %v1083_v29 }
  0x5d   : > { %1500 = vmatmul.mubr.msk.bf16.vlgmr.msra.gmra.mrb[4].mxu1 %vm239_vm1, %v642_v40 }
  0x5e   : > { %1540 = vmatmul.mubr.msk.bf16.gmra.mrb[4].mxu0 %vm239_vm1, %v1084_v43 }
 0x11c   : > { %v1487_v44 = vpop.f32.mrb[0].mxu1 }
 0x11d   : > { %v583_v46 = vpop.f32.mrb[1].mxu1 }
 0x11e   : > { %v1488_v47 = vpop.f32.mrb[2].mxu1 }
 0x11f   : > { %v586_v45 = vpop.f32.mrb[3].mxu1 }
 0x129   : > { %v1537_v48 = vpop.f32.mrb[0].mxu0 }
 0x12a   : > { %v1545_v49 = vadd.f32 %v1537_v48, %v1487_v44  ;;  %v1136_v50 = vpop.f32.mrb[1].mxu0 }
 0x12b   : > { %v1546_v51 = vadd.f32 %v1136_v50, %v583_v46  ;;  %v1538_v52 = vpop.f32.mrb[2].mxu0 }
 0x12c   : > { %1177 = vst [vmem:[%s192_s20 + $0x10] sm:$0xff] %v1545_v49  ;;  %v1547_v53 = vadd.f32 %v1538_v52, %v1488_v47  ;;  %v1139_v54 = vpop.f32.mrb[3].mxu0 }
 0x12d   : > { %1175 = vst [vmem:[%s192_s20] sm:$0xff] %v1546_v51  ;;  %v1548_v55 = vadd.f32 %v1139_v54, %v586_v45 }
 0x12e   : > { %1178 = vst [vmem:[%s192_s20 + $0x18] sm:$0xff] %v1547_v53 }
 0x12f   : > { %1176 = vst [vmem:[%s192_s20 + $0x8] sm:$0xff] %v1548_v55 }
 0x130   : > { %v1501_v56 = vpop.f32.mrb[4].mxu1 }
 0x131   : > { %v1541_v57 = vpop.f32.mrb[4].mxu0  ;;  %v710_v58 = vpop.f32.mrb[5].mxu1  ;;  %1186 = sbr.rel (%p1405_p5) target bundleno = 312 (0x138), region = 32 }
 0x132   : > { %v1549_v59 = vadd.f32 %v1541_v57, %v1501_v56  ;;  %v1152_v60 = vpop.f32.mrb[5].mxu0  ;;  %v1502_v61 = vpop.f32.mrb[6].mxu1 }
 0x133   : > { %v1550_v62 = vadd.f32 %v1152_v60, %v710_v58  ;;  %v1542_v63 = vpop.f32.mrb[6].mxu0  ;;  %v713_v0 = vpop.f32.mrb[7].mxu1 }
 0x134   : > { %1181 = vst [vmem:[%s192_s20 + $0x30] sm:$0xff] %v1549_v59  ;;  %v1551_v2 = vadd.f32 %v1542_v63, %v1502_v61  ;;  %v1155_v4 = vpop.f32.mrb[7].mxu0 }
 0x135   : > { %1179 = vst [vmem:[%s192_s20 + $0x20] sm:$0xff] %v1550_v62  ;;  %v1552_v5 = vadd.f32 %v1155_v4, %v713_v0 }
 0x136   : > { %1182 = vst [vmem:[%s192_s20 + $0x38] sm:$0xff] %v1551_v2 }
 0x137   : > { %1180 = vst [vmem:[%s192_s20 + $0x28] sm:$0xff] %v1552_v5 }
 0x138 PF: > { %v1190_v8 = vadd.f32 %v1548_v55, %v1546_v51  ;;  %v1206_v9 = vmul.f32 %v1546_v51, %v1546_v51  ;;  %v1207_v11 = vmul.f32 %v1548_v55, %v1548_v55  ;;  %v1208_v12 = vmul.f32 %v1545_v49, %v1545_v49  ;;  %v1189_v42 = vld [vmem:[%s1944_s3] sm:$0x1] }
 0x139   : > { %v1209_v18 = vmul.f32 %v1547_v53, %v1547_v53  ;;  %v1210_v1 = vmul.f32 %v1550_v62, %v1550_v62  ;;  %v1211_v19 = vmul.f32 %v1552_v5, %v1552_v5  ;;  %v1212_v23 = vmul.f32 %v1549_v59, %v1549_v59  ;;  %v1205_v37 = vld [vmem:[%s1945_s4] sm:$0x1] }
 0x13a   : > { %v1191_v15 = vadd.f32 %v1545_v49, %v1190_v8  ;;  %v1214_v7 = vadd.f32 %v1207_v11, %v1206_v9  ;;  %v1213_v28 = vmul.f32 %v1551_v2, %v1551_v2 }
 0x13c   : > { %v1192_v10 = vadd.f32 %v1547_v53, %v1191_v15  ;;  %v1215_v13 = vadd.f32 %v1214_v7, %v1208_v12 }
 0x13e   : > { %v1193_v16 = vadd.f32 %v1550_v62, %v1192_v10  ;;  %v1216_v21 = vadd.f32 %v1215_v13, %v1209_v18 }
 0x140   : > { %v1194_v22 = vadd.f32 %v1552_v5, %v1193_v16  ;;  %v1217_v14 = vadd.f32 %v1216_v21, %v1210_v1 }
 0x142   : > { %v1195_v20 = vadd.f32 %v1549_v59, %v1194_v22  ;;  %v1218_v17 = vadd.f32 %v1217_v14, %v1211_v19 }
 0x144   : > { %v1196_v25 = vadd.f32 %v1551_v2, %v1195_v20  ;;  %v1219_v30 = vadd.f32 %v1218_v17, %v1212_v23 }
 0x146   : > { %v1197_v24 = vrot.slane %v1196_v25, 4  ;;  %v1220_v26 = vadd.f32 %v1219_v30, %v1213_v28 }
 0x148   : > { %v1198_v31 = vadd.f32 %v1197_v24, %v1196_v25  ;;  %v1221_v41 = vrot.slane %v1220_v26, 4 }
 0x14a   : > { %v1199_v32 = vrot.slane %v1198_v31, 2  ;;  %v1222_v33 = vadd.f32 %v1221_v41, %v1220_v26 }
 0x14c   : > { %v1200_v34 = vadd.f32 %v1199_v32, %v1198_v31  ;;  %v1223_v35 = vrot.slane %v1222_v33, 2 }
 0x14e   : > { %v1201_v3 = vrot.slane %v1200_v34, 1  ;;  %v1224_v27 = vadd.f32 %v1223_v35, %v1222_v33 }
 0x150   : > { %v1202_v29 = vadd.f32 %v1201_v3, %v1200_v34  ;;  %v1225_v36 = vrot.slane %v1224_v27, 1 }
 0x152   : > { %v1203_v38 = vadd.f32 %v1202_v29, %v1189_v42  ;;  %v1226_v39 = vadd.f32 %v1225_v36, %v1224_v27 }
 0x154   : > { %1204 = vst [vmem:[%s1944_s3] sm:$0x1] %v1203_v38  ;;  %v1227_v40 = vadd.f32 %v1226_v39, %v1205_v37 }
 0x156   : > { %1228 = vst [vmem:[%s1945_s4] sm:$0x1] %v1227_v40 }
 0x157 PF: > { %s15_s15 = sadd.s32 1, %s1635_s15  }
 0x158   : > { %p12_p6 = scmp.ge.s32.totalorder %s15_s15, 4  }
 0x15a   :  { %14 = sbr.rel (!%p12_p6) target bundleno = 1 (0x1), region = 91 }

// kernel: resnet_basicblock.7
= control target key start
LH: loop header
LB: loop body
LE: loop exit
PB: predicated region body
PF: predicated region fallthrough
CT: control target
= control target key end

     0   :  { %s780_s9 = smov 0   ;;  %s882_s0 = inlined_call_operand.vmem [shape: f32[2,4,8,8,4], index: 0, kind: input, shape index: {}]   ;;  %s883_s1 = inlined_call_operand.vmem [shape: bf16[4,4,128], index: 1, kind: input, shape index: {}]   ;;  %s884_s2 = inlined_call_operand.vmem [shape: f32[128,128], index: 2, kind: output, shape index: {}]  }
   0x1 LB: > { %s786_s10 = sadd.s32 4294967295, %s763_s9   ;;  %p610_p0 = scmp.ge.s32.totalorder %s763_s9, 1  ;;  %s763_s9 = sphi %s780_s9, %s12_s9  }
   0x2   : > { %p112_p1 = scmp.lt.s32.totalorder %s763_s9, 3 }
   0x4   : > { %p113_p2 = pnand %p610_p0, %p112_p1 }
   0x5   : > { %v623_v0 = vld [vmem:[%s883_s1 + $0x2] sm:$0x3] (!%p113_p2)  ;;  %vm187_vm0 = vcmask (!%p113_p2), 1041408   ;;  %v640_v1 = vld [vmem:[%s883_s1 + $0x4] sm:$0x3] (!%p113_p2)  ;;  %p134_p3 = scmp.lt.s32.totalorder (!%p113_p2), %s786_s10, 1 }
   0x6   : > { %116 = sbr.rel (%p113_p2) target bundleno = 264 (0x108), region = 28  ;;  %745 = vmatprep.subr.msk.bf16.mxu1 (!%p113_p2), %vm187_vm0, %v623_v0  ;;  %747 = vmatprep.subr.msk.bf16.mxu0 (!%p113_p2), %vm187_vm0, %v640_v1  ;;  %v189_v2 = vsel (!%p113_p2), %vm187_vm0, %v623_v0, 0  ;;  %v364_v3 = vsel (!%p113_p2), %vm187_vm0, %v640_v1, 0  ;;  %v158_v4 = vld [vmem:[%s883_s1] sm:$0x3] (!%p113_p2)  ;;  %vm174_vm1 = vcmask (!%p113_p2), 31744  }
   0x7   : > { %682 = vmatpush3.bf16.msra.mxu1 (!%p113_p2), %v189_v2  ;;  %702 = vmatpush3.bf16.msra.mxu0 (!%p113_p2), %v364_v3  ;;  %v653_v5 = vld [vmem:[%s883_s1 + $0x6] sm:$0x3] (!%p113_p2)  ;;  %v269_v15 = vsel (!%p113_p2), %vm187_vm0, %v158_v4, 0  ;;  %s613_s24 = sshll.u32 (!%p113_p2), %s786_s10, 3 }
   0x8   : > { %746 = vmatprep.subr.msk.bf16.mxu1 (!%p113_p2), %vm187_vm0, %v158_v4  ;;  %748 = vmatprep.subr.msk.bf16.mxu0 (!%p113_p2), %vm187_vm0, %v653_v5  ;;  %v467_v20 = vsel (!%p113_p2), %vm187_vm0, %v653_v5, 0  ;;  %p140_p4 = scmp.lt.s32.totalorder (!%p113_p2), %s613_s24, 15 }
   0xd   : > { %s135_s17 = scalar_select %p134_p3, %s786_s10, 1 }
   0xe   : > { %s886_s24 = smov (!%p140_p4, %s613_s24), 15 }
   0xf   : > { %s660_s20 = sshll.u32 %s135_s17, 8  ;;  %s614_s25 = sshll.u32 %s886_s24, 3 }
  0x10   : > { %s813_s23 = scalar_lea.vmem %s882_s0, %s660_s20  ;;  %s869_s28 = scalar_lea.vmem %s884_s2, %s614_s25 }
  0x11   : > { %v615_v6 = vld [vmem:[%s813_s23 + $0x40] sm:$0xff]  ;;  %v616_v7 = vld [vmem:[%s813_s23 + $0x48] sm:$0xff]  ;;  %v617_v11 = vld [vmem:[%s813_s23 + $0x50] sm:$0xff] }
  0x12   : > { %v632_v8 = vld [vmem:[%s813_s23 + $0x80] sm:$0xff]  ;;  %v168_v9 = vpack.c.bf16 %v616_v7, %v615_v6  ;;  %v633_v10 = vld [vmem:[%s813_s23 + $0x88] sm:$0xff]  ;;  %v618_v12 = vld [vmem:[%s813_s23 + $0x58] sm:$0xff] }
  0x13   : > { %v345_v13 = vpack.c.bf16 %v633_v10, %v632_v8  ;;  %v169_v14 = vpack.c.bf16 %v618_v12, %v617_v11  ;;  %v634_v16 = vld [vmem:[%s813_s23 + $0x90] sm:$0xff]  ;;  %v635_v17 = vld [vmem:[%s813_s23 + $0x98] sm:$0xff]  ;;  %v619_v18 = vld [vmem:[%s813_s23 + $0x60] sm:$0xff] }
  0x14   : > { %683 = vmatprep.mubr.msk.bf16.mxu1 %vm174_vm1, %v168_v9  ;;  %v346_v19 = vpack.c.bf16 %v635_v17, %v634_v16  ;;  %v620_v21 = vld [vmem:[%s813_s23 + $0x68] sm:$0xff]  ;;  %v636_v22 = vld [vmem:[%s813_s23 + $0xa0] sm:$0xff]  ;;  %v621_v26 = vld [vmem:[%s813_s23 + $0x70] sm:$0xff] }
  0x15   : > { %v637_v23 = vld [vmem:[%s813_s23 + $0xa8] sm:$0xff]  ;;  %703 = vmatprep.mubr.msk.bf16.mxu0 %vm174_vm1, %v345_v13  ;;  %684 = vmatmul.mubr.msk.bf16.vlgmr.msra.gmra.mrb[0].mxu1 %vm174_vm1, %v169_v14  ;;  %v170_v24 = vpack.c.bf16 %v620_v21, %v619_v18  ;;  %v622_v27 = vld [vmem:[%s813_s23 + $0x78] sm:$0xff]  ;;  %v638_v28 = vld [vmem:[%s813_s23 + $0xb0] sm:$0xff] }
  0x16   : > { %v347_v25 = vpack.c.bf16 %v637_v23, %v636_v22  ;;  %692 = vmatpush3.bf16.msra.mxu1 %v269_v15  ;;  %704 = vmatmul.mubr.msk.bf16.vlgmr.msra.gmra.mrb[0].mxu0 %vm174_vm1, %v346_v19  ;;  %v639_v29 = vld [vmem:[%s813_s23 + $0xb8] sm:$0xff]  ;;  %v146_v30 = vld [vmem:[%s813_s23] sm:$0xff]  ;;  %v147_v31 = vld [vmem:[%s813_s23 + $0x8] sm:$0xff]  ;;  %v171_v34 = vpack.c.bf16 %v622_v27, %v621_v26 }
  0x17   : > { %712 = vmatpush3.bf16.msra.mxu0 %v467_v20  ;;  %687 = vmatprep.mubr.msk.bf16.mxu1 %vm174_vm1, %v170_v24  ;;  %v645_v32 = vld [vmem:[%s813_s23 + $0xc0] sm:$0xff]  ;;  %v646_v33 = vld [vmem:[%s813_s23 + $0xc8] sm:$0xff]  ;;  %v348_v35 = vpack.c.bf16 %v639_v29, %v638_v28  ;;  %v154_v36 = vpack.c.bf16 %v147_v31, %v146_v30  ;;  %v148_v38 = vld [vmem:[%s813_s23 + $0x10] sm:$0xff] }
  0x18   : > { %707 = vmatprep.mubr.msk.bf16.mxu0 %vm174_vm1, %v347_v25  ;;  %v448_v37 = vpack.c.bf16 %v646_v33, %v645_v32  ;;  %v149_v39 = vld [vmem:[%s813_s23 + $0x18] sm:$0xff]  ;;  %v647_v40 = vld [vmem:[%s813_s23 + $0xd0] sm:$0xff]  ;;  %v150_v42 = vld [vmem:[%s813_s23 + $0x20] sm:$0xff] }
  0x19   : > { %v648_v41 = vld [vmem:[%s813_s23 + $0xd8] sm:$0xff]  ;;  %v151_v43 = vld [vmem:[%s813_s23 + $0x28] sm:$0xff]  ;;  %v649_v44 = vld [vmem:[%s813_s23 + $0xe0] sm:$0xff]  ;;  %v155_v46 = vpack.c.bf16 %v149_v39, %v148_v38 }
  0x1a   : > { %v650_v45 = vld [vmem:[%s813_s23 + $0xe8] sm:$0xff]  ;;  %v449_v47 = vpack.c.bf16 %v648_v41, %v647_v40  ;;  %v156_v48 = vpack.c.bf16 %v151_v43, %v150_v42  ;;  %v152_v50 = vld [vmem:[%s813_s23 + $0x30] sm:$0xff]  ;;  %v153_v51 = vld [vmem:[%s813_s23 + $0x38] sm:$0xff] }
  0x1b   : > { %v450_v49 = vpack.c.bf16 %v650_v45, %v649_v44  ;;  %v651_v52 = vld [vmem:[%s813_s23 + $0xf0] sm:$0xff]  ;;  %v652_v53 = vld [vmem:[%s813_s23 + $0xf8] sm:$0xff]  ;;  %v157_v54 = vpack.c.bf16 %v153_v51, %v152_v50 }
  0x1c   : > { %v451_v55 = vpack.c.bf16 %v652_v53, %v651_v52 }
  0x1d   : > { %688 = vmatmul.mubr.msk.bf16.gmra.mrb[4].mxu1 %vm174_vm1, %v171_v34 }
  0x1e   : > { %708 = vmatmul.mubr.msk.bf16.gmra.mrb[4].mxu0 %vm174_vm1, %v348_v35  ;;  %693 = vmatprep.mubr.msk.bf16.mxu1 %vm174_vm1, %v154_v36 }
  0x1f   : > { %713 = vmatprep.mubr.msk.bf16.mxu0 %vm174_vm1, %v448_v37 }
  0x25   : > { %694 = vmatmul.mubr.msk.bf16.vlgmr.msra.gmra.mrb[0].mxu1 %vm174_vm1, %v155_v46 }
  0x26   : > { %714 = vmatmul.mubr.msk.bf16.vlgmr.msra.gmra.mrb[0].mxu0 %vm174_vm1, %v449_v47  ;;  %697 = vmatprep.mubr.msk.bf16.mxu1 %vm174_vm1, %v156_v48 }
  0x27   : > { %717 = vmatprep.mubr.msk.bf16.mxu0 %vm174_vm1, %v450_v49 }
  0x2d   : > { %698 = vmatmul.mubr.msk.bf16.gmra.mrb[4].mxu1 %vm174_vm1, %v157_v54 }
  0x2e   : > { %718 = vmatmul.mubr.msk.bf16.gmra.mrb[4].mxu0 %vm174_vm1, %v451_v55 }
  0xf8   : > { %v695_v56 = vpop.f32.mrb[0].mxu1 }
  0xf9   : > { %v715_v57 = vpop.f32.mrb[0].mxu0  ;;  %v305_v58 = vpop.f32.mrb[1].mxu1 }
  0xfa   : > { %v721_v59 = vadd.f32 %v715_v57, %v695_v56  ;;  %v503_v60 = vpop.f32.mrb[1].mxu0  ;;  %v696_v61 = vpop.f32.mrb[2].mxu1 }
  0xfb   : > { %v722_v62 = vadd.f32 %v503_v60, %v305_v58  ;;  %v716_v63 = vpop.f32.mrb[2].mxu0  ;;  %v308_v0 = vpop.f32.mrb[3].mxu1 }
  0xfc   : > { %544 = vst [vmem:[%s869_s28 + $0x10] sm:$0xff] %v721_v59  ;;  %v723_v1 = vadd.f32 %v716_v63, %v696_v61  ;;  %v506_v2 = vpop.f32.mrb[3].mxu0 }
  0xfd   : > { %542 = vst [vmem:[%s869_s28] sm:$0xff] %v722_v62  ;;  %v724_v3 = vadd.f32 %v506_v2, %v308_v0 }
  0xfe   : > { %545 = vst [vmem:[%s869_s28 + $0x18] sm:$0xff] %v723_v1 }
  0xff   : > { %543 = vst [vmem:[%s869_s28 + $0x8] sm:$0xff] %v724_v3 }
 0x100   : > { %v699_v4 = vpop.f32.mrb[4].mxu1 }
 0x101   : > { %v719_v5 = vpop.f32.mrb[4].mxu0  ;;  %v321_v6 = vpop.f32.mrb[5].mxu1 }
 0x102   : > { %v725_v7 = vadd.f32 %v719_v5, %v699_v4  ;;  %v519_v8 = vpop.f32.mrb[5].mxu0  ;;  %v700_v9 = vpop.f32.mrb[6].mxu1 }
 0x103   : > { %v726_v10 = vadd.f32 %v519_v8, %v321_v6  ;;  %v720_v11 = vpop.f32.mrb[6].mxu0  ;;  %v324_v12 = vpop.f32.mrb[7].mxu1 }
 0x104   : > { %548 = vst [vmem:[%s869_s28 + $0x30] sm:$0xff] %v725_v7  ;;  %v727_v13 = vadd.f32 %v720_v11, %v700_v9  ;;  %v522_v14 = vpop.f32.mrb[7].mxu0 }
 0x105   : > { %546 = vst [vmem:[%s869_s28 + $0x20] sm:$0xff] %v726_v10  ;;  %v728_v15 = vadd.f32 %v522_v14, %v324_v12 }
 0x106   : > { %549 = vst [vmem:[%s869_s28 + $0x38] sm:$0xff] %v727_v13 }
 0x107   : > { %547 = vst [vmem:[%s869_s28 + $0x28] sm:$0xff] %v728_v15 }
 0x108 PF: > { %s12_s9 = sadd.s32 1, %s763_s9  }
 0x109   : > { %p9_p5 = scmp.ge.s32.totalorder %s12_s9, 4  }
 0x10b   :  { %11 = sbr.rel (!%p9_p5) target bundleno = 1 (0x1), region = 64 }

// kernel: resnet_basicblock.9
= control target key start
LH: loop header
LB: loop body
LE: loop exit
PB: predicated region body
PF: predicated region fallthrough
CT: control target
= control target key end

     0   :  { %v54_v7 = vlaneseq  ;;  %s384_s0 = inlined_call_operand.vmem [shape: f32[128,128], index: 0, kind: input, shape index: {}]   ;;  %s385_s1 = inlined_call_operand.vmem [shape: f32[1,128], index: 1, kind: input, shape index: {}]   ;;  %s386_s2 = inlined_call_operand.vmem [shape: f32[1,128], index: 2, kind: input, shape index: {}]   ;;  %s387_s3 = inlined_call_operand.vmem [shape: f32[1,128], index: 3, kind: input, shape index: {}]   ;;  %s388_s4 = inlined_call_operand.vmem [shape: f32[1,128], index: 4, kind: input, shape index: {}]   ;;  %s389_s5 = inlined_call_operand.vmem [shape: f32[128,128], index: 5, kind: input, shape index: {}]   ;;  %s390_s6 = inlined_call_operand.hbm [shape: f32[128,128], index: 6, kind: output, shape index: {}]  }
   0x1   :  { %v24_v0 = vld [vmem:[%s385_s1] sm:$0x1] }
   0x2   :  { %v26_v1 = vld [vmem:[%s386_s2] sm:$0x1]  ;;  %v25_v2 = vmul.f32 0.0078125, %v24_v0 }
   0x3   :  { %v27_v3 = vmul.f32 0.0078125, %v26_v1 }
   0x4   :  { %v28_v4 = vmul.f32 %v25_v2, %v25_v2 }
   0x6   :  { %v29_v5 = vsub.f32 %v27_v3, %v28_v4 }
   0x8   :  { %v31_v6 = vadd.f32 1e-05, %v29_v5 }
   0xa   :  { %164 = vrsqrt.f32 %v31_v6 }
   0xb   :  { %11 = vsyncpa [#allocation3], 0  ;;  %v55_v8 = vshrl.u32 %v54_v7, 7  ;;  %v30_v9 = vld [vmem:[%s387_s3] sm:$0x1]  ;;  %v38_v15 = vld [vmem:[%s384_s0 + $0x8] sm:$0xff] }
   0xc   :  { %v34_v13 = vld [vmem:[%s388_s4] sm:$0x1]  ;;  %v39_v16 = vld [vmem:[%s384_s0 + $0x10] sm:$0xff]  ;;  %v40_v17 = vld [vmem:[%s384_s0 + $0x18] sm:$0xff]  ;;  %s190_s9 = smov [#allocation2]  }
   0xd   :  { %v56_v10 = vsub.s32 0, %v55_v8  ;;  %v37_v14 = vld [vmem:[%s384_s0] sm:$0xff]  ;;  %v42_v21 = vld [vmem:[%s384_s0 + $0x28] sm:$0xff]  ;;  %v43_v22 = vld [vmem:[%s384_s0 + $0x30] sm:$0xff]  ;;  %s150_s10 = sshll.u32 %s190_s9, 4  ;;  %s151_s10 = int_to_ptr.vmem [resolvable:$true] %s150_s10 }
   0xe   :  { %v41_v18 = vld [vmem:[%s384_s0 + $0x20] sm:$0xff]  ;;  %v44_v23 = vld [vmem:[%s384_s0 + $0x38] sm:$0xff]  ;;  %v46_v25 = vld [vmem:[%s384_s0 + $0x48] sm:$0xff]  ;;  %p171_p1 = scmp.lt.s32.totalorder %s151_s10, %s151_s10 }
   0xf   :  { %v45_v24 = vld [vmem:[%s384_s0 + $0x40] sm:$0xff]  ;;  %v47_v26 = vld [vmem:[%s384_s0 + $0x50] sm:$0xff]  ;;  %v48_v31 = vld [vmem:[%s384_s0 + $0x58] sm:$0xff] }
  0x10   :  { %v49_v32 = vld [vmem:[%s384_s0 + $0x60] sm:$0xff]  ;;  %v50_v33 = vld [vmem:[%s384_s0 + $0x68] sm:$0xff]  ;;  %v99_v44 = vld [vmem:[%s389_s5 + $0x10] sm:$0xff] }
  0x11   :  { %v97_v39 = vld [vmem:[%s389_s5] sm:$0xff]  ;;  %v98_v40 = vld [vmem:[%s389_s5 + $0x8] sm:$0xff]  ;;  %v100_v45 = vld [vmem:[%s389_s5 + $0x18] sm:$0xff] }
  0x12   :  { %v101_v46 = vld [vmem:[%s389_s5 + $0x20] sm:$0xff]  ;;  %v102_v55 = vld [vmem:[%s389_s5 + $0x28] sm:$0xff]  ;;  %v103_v56 = vld [vmem:[%s389_s5 + $0x30] sm:$0xff] }
  0x13   :  { %v104_v57 = vld [vmem:[%s389_s5 + $0x38] sm:$0xff]  ;;  %v51_v3 = vld [vmem:[%s384_s0 + $0x70] sm:$0xff] }
  0x14   :  { %v165_v11 = vpop.eup %164  ;;  %v52_v4 = vld [vmem:[%s384_s0 + $0x78] sm:$0xff] }
  0x15   :  { %v33_v12 = vmul.f32 %v165_v11, %v30_v9  ;;  %v106_v9 = vld [vmem:[%s389_s5 + $0x48] sm:$0xff]  ;;  %v108_v11 = vld [vmem:[%s389_s5 + $0x58] sm:$0xff] }
  0x17   :  { %v35_v19 = vmul.f32 %v33_v12, %v25_v2  ;;  %v255_v20 = vrot.slane %v33_v12, %v56_v10  ;;  %v105_v2 = vld [vmem:[%s389_s5 + $0x40] sm:$0xff] }
  0x19   :  { %v36_v27 = vsub.f32 %v34_v13, %v35_v19  ;;  %v59_v28 = vmul.f32 %v255_v20, %v37_v14  ;;  %v60_v29 = vmul.f32 %v255_v20, %v38_v15  ;;  %v61_v30 = vmul.f32 %v255_v20, %v39_v16  ;;  %v109_v16 = vld [vmem:[%s389_s5 + $0x60] sm:$0xff] }
  0x1a   :  { %v62_v34 = vmul.f32 %v255_v20, %v40_v17  ;;  %v63_v35 = vmul.f32 %v255_v20, %v41_v18  ;;  %v64_v36 = vmul.f32 %v255_v20, %v42_v21  ;;  %v65_v37 = vmul.f32 %v255_v20, %v43_v22  ;;  %v110_v17 = vld [vmem:[%s389_s5 + $0x68] sm:$0xff] }
  0x1b   :  { %v291_v38 = vrot.slane %v36_v27, %v56_v10  ;;  %v66_v41 = vmul.f32 %v255_v20, %v44_v23  ;;  %v67_v42 = vmul.f32 %v255_v20, %v45_v24  ;;  %v68_v43 = vmul.f32 %v255_v20, %v46_v25  ;;  %v107_v10 = vld [vmem:[%s389_s5 + $0x50] sm:$0xff] }
  0x1c   :  { %v69_v47 = vmul.f32 %v255_v20, %v47_v26  ;;  %v70_v48 = vmul.f32 %v255_v20, %v48_v31  ;;  %v71_v49 = vmul.f32 %v255_v20, %v49_v32  ;;  %v72_v50 = vmul.f32 %v255_v20, %v50_v33  ;;  %v111_v27 = vld [vmem:[%s389_s5 + $0x70] sm:$0xff] }
  0x1d   :  { %v81_v51 = vadd.f32 %v291_v38, %v59_v28  ;;  %v82_v52 = vadd.f32 %v291_v38, %v60_v29  ;;  %v83_v53 = vadd.f32 %v291_v38, %v61_v30  ;;  %v84_v54 = vadd.f32 %v291_v38, %v62_v34  ;;  %v112_v28 = vld [vmem:[%s389_s5 + $0x78] sm:$0xff]  ;;  %s166_s5 = scalar_lea.vmem %s151_s10, 2048 }
  0x1e   :  { %v85_v58 = vadd.f32 %v291_v38, %v63_v35  ;;  %v86_v59 = vadd.f32 %v291_v38, %v64_v36  ;;  %v87_v60 = vadd.f32 %v291_v38, %v65_v37  ;;  %v88_v61 = vadd.f32 %v291_v38, %v66_v41  ;;  %p167_p0 = scmp.ne.s32.totalorder %s151_s10, %s166_s5  ;;  %p172_p2 = scmp.lt.s32.totalorder %s166_s5, %s166_s5 }
  0x1f   :  { %v113_v62 = vadd.f32 %v97_v39, %v81_v51  ;;  %v114_v63 = vadd.f32 %v98_v40, %v82_v52  ;;  %v115_v0 = vadd.f32 %v99_v44, %v83_v53  ;;  %v116_v1 = vadd.f32 %v100_v45, %v84_v54 }
  0x20   :  { %v117_v5 = vadd.f32 %v101_v46, %v85_v58  ;;  %v118_v6 = vadd.f32 %v102_v55, %v86_v59  ;;  %v119_v7 = vadd.f32 %v103_v56, %v87_v60  ;;  %v120_v8 = vadd.f32 %v104_v57, %v88_v61  ;;  %p173_p3 = por %p172_p2, %p171_p1 }
  0x21   :  { %129 = vst [vmem:[#allocation2] sm:$0xff] %v113_v62  ;;  %130 = vst [vmem:[#allocation2 + $0x8] sm:$0xff] %v114_v63  ;;  %v89_v12 = vadd.f32 %v291_v38, %v67_v42  ;;  %v90_v13 = vadd.f32 %v291_v38, %v68_v43  ;;  %v91_v14 = vadd.f32 %v291_v38, %v69_v47 }
  0x22   :  { %131 = vst [vmem:[#allocation2 + $0x10] sm:$0xff] %v115_v0  ;;  %132 = vst [vmem:[#allocation2 + $0x18] sm:$0xff] %v116_v1  ;;  %v92_v15 = vadd.f32 %v291_v38, %v70_v48  ;;  %v93_v18 = vadd.f32 %v291_v38, %v71_v49  ;;  %v94_v19 = vadd.f32 %v291_v38, %v72_v50  ;;  %p174_p4 = pnand %p173_p3, %p167_p0 }
  0x23   :  { %133 = vst [vmem:[#allocation2 + $0x20] sm:$0xff] %v117_v5  ;;  %134 = vst [vmem:[#allocation2 + $0x28] sm:$0xff] %v118_v6  ;;  %v73_v21 = vmul.f32 %v255_v20, %v51_v3  ;;  %v74_v22 = vmul.f32 %v255_v20, %v52_v4  ;;  %v121_v23 = vadd.f32 %v105_v2, %v89_v12 }
  0x24   :  { %135 = vst [vmem:[#allocation2 + $0x30] sm:$0xff] %v119_v7  ;;  %136 = vst [vmem:[#allocation2 + $0x38] sm:$0xff] %v120_v8  ;;  %v122_v24 = vadd.f32 %v106_v9, %v90_v13  ;;  %v123_v25 = vadd.f32 %v107_v10, %v91_v14  ;;  %v124_v26 = vadd.f32 %v108_v11, %v92_v15 }
  0x25   :  { %v125_v29 = vadd.f32 %v109_v16, %v93_v18  ;;  %v126_v30 = vadd.f32 %v110_v17, %v94_v19  ;;  %v95_v31 = vadd.f32 %v291_v38, %v73_v21  ;;  %v96_v20 = vadd.f32 %v291_v38, %v74_v22  ;;  %137 = vst [vmem:[#allocation2 + $0x40] sm:$0xff] %v121_v23 }
  0x26   :  { %138 = vst [vmem:[#allocation2 + $0x48] sm:$0xff] %v122_v24  ;;  %139 = vst [vmem:[#allocation2 + $0x50] sm:$0xff] %v123_v25 }
  0x27   :  { %140 = vst [vmem:[#allocation2 + $0x58] sm:$0xff] %v124_v26  ;;  %141 = vst [vmem:[#allocation2 + $0x60] sm:$0xff] %v125_v29  ;;  %v127_v32 = vadd.f32 %v111_v27, %v95_v31  ;;  %v128_v33 = vadd.f32 %v112_v28, %v96_v20 }
  0x28   :  { %142 = vst [vmem:[#allocation2 + $0x68] sm:$0xff] %v126_v30 }
  0x29   :  { %143 = vst [vmem:[#allocation2 + $0x70] sm:$0xff] %v127_v32  ;;  %144 = vst [vmem:[#allocation2 + $0x78] sm:$0xff] %v128_v33 }
  0x2a   :  { %177 = shalt.err (!%p174_p4)
}
  0x2b   :  { %s178_s12 = scalar_lea.hbm %s390_s6, 2048 }
  0x2c   :  { %p179_p5 = scmp.ne.s32.totalorder %s390_s6, %s178_s12  ;;  %p182_p6 = scmp.lt.u32.totalorder %s178_s12, %s390_s6 }
  0x2e   :  { %p184_p7 = pnand %p182_p6, %p179_p5 }
  0x30   :  { %187 = shalt.err (!%p184_p7)
}
  0x31   :  { %s191_s17 = smov 128   ;;  %s192_s18 = smov 8  }
  0x32   :  { %156 = dma.vmem_to_hbm [thread:$0]  %s151_s10, 2048, %s390_s6, [#allocation3], %s191_s17, %s191_s17, %s192_s18  }
  0x33   :  { %188 = dma.done.wait [#allocation3], 2048  }
  0x34   :  { %189 = vsyncadd [#allocation3], 4294965248 }
  0x35   :  { %160 = vsyncpa [#allocation3], 1 }

// kernel: resnet_basicblock.8
= control target key start
LH: loop header
LB: loop body
LE: loop exit
PB: predicated region body
PF: predicated region fallthrough
CT: control target
= control target key end

     0   :  { %s2503_s15 = smov 0   ;;  %s2900_s0 = inlined_call_operand.vmem [shape: f32[2,1,10,10,128], index: 0, kind: input, shape index: {}]   ;;  %s2901_s1 = inlined_call_operand.vmem [shape: bf16[9,128,128], index: 1, kind: input, shape index: {}]   ;;  %s2902_s2 = inlined_call_operand.vmem [shape: f32[128,128], index: 2, kind: output, shape index: {0}]   ;;  %s2903_s3 = inlined_call_operand.vmem [shape: f32[1,128], index: 3, kind: output, shape index: {1}]   ;;  %s2904_s4 = inlined_call_operand.vmem [shape: f32[1,128], index: 4, kind: output, shape index: {2}]  }
   0x1 LB: > { %s2509_s16 = sadd.s32 4294967295, %s2475_s15   ;;  %p1728_p0 = scmp.ge.s32.totalorder %s2475_s15, 1  ;;  %s2475_s15 = sphi %s2503_s15, %s15_s15  }
   0x2   : > { %p157_p1 = scmp.lt.s32.totalorder %s2475_s15, 3 }
   0x4   : > { %p158_p2 = pnand %p1728_p0, %p157_p1 }
   0x5   : > { %v2397_v0 = vld [vmem:[%s2901_s1 + $0x40] sm:$0xff] (!%p158_p2)   ;;  %p183_p3 = scmp.lt.s32.totalorder (!%p158_p2), %s2509_s16, 1  ;;  %v2399_v2 = vld [vmem:[%s2901_s1 + $0x48] sm:$0xff] (!%p158_p2)   ;;  %v2401_v4 = vld [vmem:[%s2901_s1 + $0x50] sm:$0xff] (!%p158_p2)   ;;  %p1980_p5 = scmp.ne.s32.totalorder (!%p158_p2), %s2509_s16, 0 }
   0x6   : > { %161 = sbr.rel (%p158_p2) target bundleno = 416 (0x1a0), region = 28  ;;  %v2398_v1 = vld [vmem:[%s2901_s1 + $0x100] sm:$0xff] (!%p158_p2)   ;;  %2091 = vmatprep.subr.bf16.mxu1 (!%p158_p2), %v2397_v0  ;;  %v2400_v3 = vld [vmem:[%s2901_s1 + $0x108] sm:$0xff] (!%p158_p2)   ;;  %v2402_v5 = vld [vmem:[%s2901_s1 + $0x110] sm:$0xff] (!%p158_p2)  }
   0x7   : > { %2187 = vmatprep.subr.bf16.mxu0 (!%p158_p2), %v2398_v1  ;;  %2092 = vmatpush3.bf16.msra.mxu1 (!%p158_p2), %v2397_v0  ;;  %v2403_v6 = vld [vmem:[%s2901_s1 + $0x58] sm:$0xff] (!%p158_p2)   ;;  %v2405_v8 = vld [vmem:[%s2901_s1 + $0x60] sm:$0xff] (!%p158_p2)   ;;  %v2407_v10 = vld [vmem:[%s2901_s1 + $0x68] sm:$0xff] (!%p158_p2)  }
   0x8   : > { %2188 = vmatpush3.bf16.msra.mxu0 (!%p158_p2), %v2398_v1  ;;  %2093 = vmatprep.subr.bf16.mxu1 (!%p158_p2), %v2399_v2  ;;  %v2404_v7 = vld [vmem:[%s2901_s1 + $0x118] sm:$0xff] (!%p158_p2)   ;;  %v2406_v9 = vld [vmem:[%s2901_s1 + $0x120] sm:$0xff] (!%p158_p2)   ;;  %v2408_v13 = vld [vmem:[%s2901_s1 + $0x128] sm:$0xff] (!%p158_p2)  }
   0x9   : > { %2189 = vmatprep.subr.bf16.mxu0 (!%p158_p2), %v2400_v3  ;;  %v2409_v19 = vld [vmem:[%s2901_s1 + $0x70] sm:$0xff] (!%p158_p2)   ;;  %v2411_v22 = vld [vmem:[%s2901_s1 + $0x78] sm:$0xff] (!%p158_p2)   ;;  %v2413_v28 = vld [vmem:[%s2901_s1] sm:$0xff] (!%p158_p2)  }
   0xa   : > { %v2410_v20 = vld [vmem:[%s2901_s1 + $0x130] sm:$0xff] (!%p158_p2)   ;;  %v2412_v25 = vld [vmem:[%s2901_s1 + $0x138] sm:$0xff] (!%p158_p2)   ;;  %v2414_v29 = vld [vmem:[%s2901_s1 + $0x140] sm:$0xff] (!%p158_p2)  }
   0xb   : > { %2094 = vmatpush3.bf16.msra.mxu1 (!%p158_p2), %v2399_v2  ;;  %v2415_v35 = vld [vmem:[%s2901_s1 + $0x8] sm:$0xff] (!%p158_p2)   ;;  %v2417_v46 = vld [vmem:[%s2901_s1 + $0x10] sm:$0xff] (!%p158_p2)   ;;  %v2419_v56 = vld [vmem:[%s2901_s1 + $0x18] sm:$0xff] (!%p158_p2)  }
   0xc   : > { %2190 = vmatpush3.bf16.msra.mxu0 (!%p158_p2), %v2400_v3  ;;  %2095 = vmatprep.subr.bf16.mxu1 (!%p158_p2), %v2401_v4  ;;  %v2416_v39 = vld [vmem:[%s2901_s1 + $0x148] sm:$0xff] (!%p158_p2)   ;;  %v2418_v47 = vld [vmem:[%s2901_s1 + $0x150] sm:$0xff] (!%p158_p2)   ;;  %v2420_v58 = vld [vmem:[%s2901_s1 + $0x158] sm:$0xff] (!%p158_p2)  }
   0xd   : > { %s184_s29 = scalar_select %p183_p3, %s2509_s16, 1  ;;  %2191 = vmatprep.subr.bf16.mxu0 %v2402_v5  ;;  %v2421_v63 = vld [vmem:[%s2901_s1 + $0x20] sm:$0xff]   ;;  %v2423_v1 = vld [vmem:[%s2901_s1 + $0x28] sm:$0xff]  }
   0xe   : > { %v2422_v0 = vld [vmem:[%s2901_s1 + $0x160] sm:$0xff]   ;;  %v2424_v2 = vld [vmem:[%s2901_s1 + $0x168] sm:$0xff]  }
   0xf   : > { %s2387_s8 = smul.u32 160, %s184_s29  ;;  %2096 = vmatpush3.bf16.msra.mxu1 %v2401_v4  ;;  %v2425_v4 = vld [vmem:[%s2901_s1 + $0x30] sm:$0xff]  }
  0x10   : > { %2192 = vmatpush3.bf16.msra.mxu0 %v2402_v5  ;;  %2097 = vmatprep.subr.bf16.mxu1 %v2403_v6  ;;  %v2426_v5 = vld [vmem:[%s2901_s1 + $0x170] sm:$0xff]  }
  0x11   : > { %2193 = vmatprep.subr.bf16.mxu0 %v2404_v7  ;;  %s2548_s17 = scalar_lea.vmem %s2900_s0, %s2387_s8 }
  0x12   : > { %v231_v11 = vld [vmem:[%s2548_s17 + $0x1] sm:$0xff]  ;;  %v232_v12 = vld [vmem:[%s2548_s17 + $0x11] sm:$0xff] }
  0x13   : > { %2098 = vmatpush3.bf16.msra.mxu1 %v2403_v6  ;;  %v239_v14 = vmax.f32 %v231_v11, 0.0  ;;  %v240_v15 = vmax.f32 %v232_v12, 0.0  ;;  %v1821_v16 = vld [vmem:[%s2548_s17 + $0x21] sm:$0xff]  ;;  %v234_v23 = vld [vmem:[%s2548_s17 + $0x31] sm:$0xff] }
  0x14   : > { %2194 = vmatpush3.bf16.msra.mxu0 %v2404_v7  ;;  %2099 = vmatprep.subr.bf16.mxu1 %v2405_v8  ;;  %v820_v17 = vmax.f32 %v1821_v16, 0.0  ;;  %v1823_v24 = vld [vmem:[%s2548_s17 + $0x41] sm:$0xff]  ;;  %v242_v26 = vmax.f32 %v234_v23, 0.0  ;;  %v236_v30 = vld [vmem:[%s2548_s17 + $0x51] sm:$0xff] }
  0x15   : > { %2195 = vmatprep.subr.bf16.mxu0 %v2406_v9  ;;  %v247_v18 = vpack.c.bf16 %v240_v15, %v239_v14  ;;  %v822_v27 = vmax.f32 %v1823_v24, 0.0  ;;  %v244_v32 = vmax.f32 %v236_v30, 0.0  ;;  %v1825_v34 = vld [vmem:[%s2548_s17 + $0x61] sm:$0xff]  ;;  %v238_v37 = vld [vmem:[%s2548_s17 + $0x71] sm:$0xff] }
  0x16   : > { %v827_v21 = vpack.c.bf16 %v820_v17, %v240_v15  ;;  %v2580_v31 = vpack.c.bf16 %v242_v26, %v820_v17  ;;  %v824_v36 = vmax.f32 %v1825_v34, 0.0  ;;  %v2588_v38 = vld [vmem:[%s2548_s17 + $0x81] sm:$0xff]  ;;  %v246_v42 = vmax.f32 %v238_v37, 0.0  ;;  %v2599_v45 = vld [vmem:[%s2548_s17 + $0x10] sm:$0xff]  ;;  %v2428_v14 = vld [vmem:[%s2901_s1 + $0x178] sm:$0xff]  }
  0x17   : > { %2100 = vmatpush3.bf16.msra.mxu1 %v2405_v8  ;;  %2107 = vmatprep.mubr.bf16.mxu1 %v247_v18  ;;  %v828_v33 = vpack.c.bf16 %v822_v27, %v242_v26  ;;  %v2593_v40 = vpack.c.bf16 %v244_v32, %v822_v27  ;;  %v826_v43 = vmax.f32 %v2588_v38, 0.0  ;;  %v195_v44 = vld [vmem:[%s2548_s17] sm:$0xff]  ;;  %v204_v49 = vmax.f32 %v2599_v45, 0.0  ;;  %v2610_v50 = vld [vmem:[%s2548_s17 + $0x12] sm:$0xff]  ;;  %v2432_v34 = vld [vmem:[%s2901_s1 + $0x188] sm:$0xff]  }
  0x18   : > { %2196 = vmatpush3.bf16.msra.mxu0 %v2406_v9  ;;  %2101 = vmatprep.subr.bf16.mxu1 %v2407_v10  ;;  %v829_v41 = vpack.c.bf16 %v824_v36, %v244_v32  ;;  %v203_v48 = vmax.f32 %v195_v44, 0.0  ;;  %v1853_v51 = vld [vmem:[%s2548_s17 + $0x22] sm:$0xff]  ;;  %v2613_v52 = vpack.c.bf16 %v246_v42, %v824_v36  ;;  %v977_v53 = vmax.f32 %v2610_v50, 0.0  ;;  %v2622_v57 = vld [vmem:[%s2548_s17 + $0x32] sm:$0xff] }
  0x19   : > { %2197 = vmatprep.subr.bf16.mxu0 %v2408_v13  ;;  %2203 = vmatprep.mubr.bf16.mxu0 %v827_v21  ;;  %v978_v54 = vmax.f32 %v1853_v51, 0.0  ;;  %v830_v55 = vpack.c.bf16 %v826_v43, %v246_v42  ;;  %v979_v60 = vmax.f32 %v2622_v57, 0.0  ;;  %v1855_v3 = vld [vmem:[%s2548_s17 + $0x42] sm:$0xff]  ;;  %v1856_v6 = vld [vmem:[%s2548_s17 + $0x52] sm:$0xff] }
  0x1a   : > { %v211_v59 = vpack.c.bf16 %v204_v49, %v203_v48  ;;  %v1857_v7 = vld [vmem:[%s2548_s17 + $0x62] sm:$0xff]  ;;  %v980_v9 = vmax.f32 %v1855_v3, 0.0  ;;  %v2660_v11 = vld [vmem:[%s2548_s17 + $0x30] sm:$0xff] }
  0x1b   : > { %2102 = vmatpush3.bf16.msra.mxu1 %v2407_v10  ;;  %v985_v61 = vpack.c.bf16 %v978_v54, %v977_v53  ;;  %v2633_v62 = vpack.c.bf16 %v979_v60, %v978_v54  ;;  %v2657_v8 = vld [vmem:[%s2548_s17 + $0x20] sm:$0xff]  ;;  %v981_v10 = vmax.f32 %v1856_v6, 0.0  ;;  %v1858_v12 = vld [vmem:[%s2548_s17 + $0x72] sm:$0xff]  ;;  %v982_v15 = vmax.f32 %v1857_v7, 0.0  ;;  %v2439_v50 = vld [vmem:[%s2901_s1 + $0xa8] sm:$0xff]  }
  0x1c   : > { %2198 = vmatpush3.bf16.msra.mxu0 %v2408_v13  ;;  %2103 = vmatprep.subr.bf16.mxu1 %v2409_v19  ;;  %v2427_v13 = vld [vmem:[%s2901_s1 + $0x38] sm:$0xff]   ;;  %v983_v16 = vmax.f32 %v1858_v12, 0.0  ;;  %v205_v18 = vmax.f32 %v2657_v8, 0.0  ;;  %v2677_v21 = vld [vmem:[%s2548_s17 + $0x50] sm:$0xff]  ;;  %v2429_v23 = vld [vmem:[%s2901_s1 + $0x80] sm:$0xff]   ;;  %v986_v30 = vpack.c.bf16 %v980_v9, %v979_v60 }
  0x1d   : > { %2199 = vmatprep.subr.bf16.mxu0 %v2410_v20  ;;  %v2669_v17 = vpack.c.bf16 %v981_v10, %v980_v9  ;;  %v2430_v24 = vld [vmem:[%s2901_s1 + $0x180] sm:$0xff]   ;;  %v208_v26 = vmax.f32 %v2677_v21, 0.0  ;;  %v2700_v32 = vld [vmem:[%s2548_s17 + $0x70] sm:$0xff]  ;;  %v987_v37 = vpack.c.bf16 %v982_v15, %v981_v10  ;;  %v2435_v54 = vld [vmem:[%s2901_s1 + $0x98] sm:$0xff]  }
  0x1e   : > { %v2433_v44 = vld [vmem:[%s2901_s1 + $0x90] sm:$0xff]   ;;  %v2437_v57 = vld [vmem:[%s2901_s1 + $0xa0] sm:$0xff]   ;;  %v2455_v45 = vld [vmem:[%s2901_s1 + $0xe8] sm:$0xff]  }
  0x1f   : > { %2104 = vmatpush3.bf16.msra.mxu1 %v2409_v19  ;;  %v2673_v19 = vld [vmem:[%s2548_s17 + $0x40] sm:$0xff]  ;;  %v2442_v60 = vld [vmem:[%s2901_s1 + $0x1b0] sm:$0xff]   ;;  %v2464_v21 = vld [vmem:[%s2901_s1 + $0x218] sm:$0xff]  }
  0x20   : > { %2200 = vmatpush3.bf16.msra.mxu0 %v2410_v20  ;;  %2105 = vmatprep.subr.bf16.mxu1 %v2411_v22  ;;  %v206_v20 = vmax.f32 %v2660_v11, 0.0  ;;  %v2773_v3 = vld [vmem:[%s2548_s17 + $0x80] sm:$0xff]  ;;  %v2449_v9 = vld [vmem:[%s2901_s1 + $0xd0] sm:$0xff]   ;;  %v2466_v38 = vld [vmem:[%s2901_s1 + $0x228] sm:$0xff]  }
  0x21   : > { %2201 = vmatprep.subr.bf16.mxu0 %v2412_v25  ;;  %v1142_v6 = vmax.f32 %v2773_v3, 0.0  ;;  %v2450_v10 = vld [vmem:[%s2901_s1 + $0x1d0] sm:$0xff]  }
  0x22   : > { %v212_v27 = vpack.c.bf16 %v206_v20, %v205_v18  ;;  %v2457_v8 = vld [vmem:[%s2901_s1 + $0xf0] sm:$0xff]  }
  0x23   : > { %2106 = vmatpush3.bf16.msra.mxu1 %v2411_v22  ;;  %v2679_v22 = vpack.c.bf16 %v983_v16, %v982_v15  ;;  %v669_v15 = vpack.c.bf16 %v205_v18, %v204_v49  ;;  %v2456_v49 = vld [vmem:[%s2901_s1 + $0x1e8] sm:$0xff]   ;;  %v2459_v18 = vld [vmem:[%s2901_s1 + $0xf8] sm:$0xff]  }
  0x24   : > { %2202 = vmatpush3.bf16.msra.mxu0 %v2412_v25  ;;  %2115 = vmatprep.subr.bf16.mxu1 %v2413_v28  ;;  %v207_v25 = vmax.f32 %v2673_v19, 0.0  ;;  %v2463_v19 = vld [vmem:[%s2901_s1 + $0x210] sm:$0xff]  }
  0x25   : > { %2211 = vmatprep.subr.bf16.mxu0 %v2414_v29 }
  0x26   : > { %2108 = vmatmul.mubr.bf16.vlgmr.msra.gmra.mrb[0].mxu1 %v2580_v31 }
  0x27   : > { %2116 = vmatpush3.bf16.msra.mxu1 %v2413_v28  ;;  %2204 = vmatmul.mubr.bf16.vlgmr.msra.gmra.mrb[0].mxu0 %v828_v33  ;;  %v2431_v28 = vld [vmem:[%s2901_s1 + $0x88] sm:$0xff]  }
  0x28   : > { %2212 = vmatpush3.bf16.msra.mxu0 %v2414_v29  ;;  %2117 = vmatprep.subr.bf16.mxu1 %v2415_v35  ;;  %v2697_v29 = vld [vmem:[%s2548_s17 + $0x60] sm:$0xff] }
  0x29   : > { %2213 = vmatprep.subr.bf16.mxu0 %v2416_v39  ;;  %2111 = vmatprep.mubr.bf16.mxu1 %v2593_v40  ;;  %v2703_v33 = vld [vmem:[%s2548_s17 + $0x82] sm:$0xff]  ;;  %v209_v36 = vmax.f32 %v2697_v29, 0.0 }
  0x2a   : > { %2207 = vmatprep.mubr.bf16.mxu0 %v829_v41  ;;  %v494_v41 = vld [vmem:[%s2548_s17 + $0x2] sm:$0xff]  ;;  %v984_v42 = vmax.f32 %v2703_v33, 0.0 }
  0x2b   : > { %2118 = vmatpush3.bf16.msra.mxu1 %v2415_v35  ;;  %v2712_v35 = vpack.c.bf16 %v208_v26, %v207_v25 }
  0x2c   : > { %2214 = vmatpush3.bf16.msra.mxu0 %v2416_v39  ;;  %2119 = vmatprep.subr.bf16.mxu1 %v2417_v46  ;;  %v210_v39 = vmax.f32 %v2700_v32, 0.0  ;;  %v988_v51 = vpack.c.bf16 %v984_v42, %v983_v16  ;;  %v2453_v16 = vld [vmem:[%s2901_s1 + $0xe0] sm:$0xff]  }
  0x2d   : > { %2215 = vmatprep.subr.bf16.mxu0 %v2418_v47 }
  0x2e   : > { %2112 = vmatmul.mubr.bf16.gmra.mrb[4].mxu1 %v2613_v52  ;;  %v214_v48 = vpack.c.bf16 %v210_v39, %v209_v36 }
  0x2f   : > { %2120 = vmatpush3.bf16.msra.mxu1 %v2417_v46  ;;  %2208 = vmatmul.mubr.bf16.gmra.mrb[4].mxu0 %v830_v55  ;;  %v2434_v46 = vld [vmem:[%s2901_s1 + $0x190] sm:$0xff]   ;;  %v2436_v55 = vld [vmem:[%s2901_s1 + $0x198] sm:$0xff]  }
  0x30   : > { %2216 = vmatpush3.bf16.msra.mxu0 %v2418_v47  ;;  %2121 = vmatprep.subr.bf16.mxu1 %v2419_v56  ;;  %v502_v47 = vmax.f32 %v494_v41, 0.0 }
  0x31   : > { %2217 = vmatprep.subr.bf16.mxu0 %v2420_v58  ;;  %2131 = vmatprep.mubr.bf16.mxu1 %v211_v59  ;;  %v2441_v59 = vld [vmem:[%s2901_s1 + $0xb0] sm:$0xff]  }
  0x32   : > { %2227 = vmatprep.mubr.bf16.mxu0 %v985_v61  ;;  %v2443_v61 = vld [vmem:[%s2901_s1 + $0xb8] sm:$0xff]  }
  0x33   : > { %2122 = vmatpush3.bf16.msra.mxu1 %v2419_v56  ;;  %v510_v56 = vpack.c.bf16 %v977_v53, %v502_v47  ;;  %v2440_v53 = vld [vmem:[%s2901_s1 + $0x1a8] sm:$0xff]  }
  0x34   : > { %2218 = vmatpush3.bf16.msra.mxu0 %v2420_v58  ;;  %2123 = vmatprep.subr.bf16.mxu1 %v2421_v63  ;;  %v2438_v58 = vld [vmem:[%s2901_s1 + $0x1a0] sm:$0xff]  }
  0x35   : > { %2219 = vmatprep.subr.bf16.mxu0 %v2422_v0 }
  0x37   : > { %2124 = vmatpush3.bf16.msra.mxu1 %v2421_v63  ;;  %v2444_v63 = vld [vmem:[%s2901_s1 + $0x1b8] sm:$0xff]  }
  0x38   : > { %2220 = vmatpush3.bf16.msra.mxu0 %v2422_v0  ;;  %2125 = vmatprep.subr.bf16.mxu1 %v2423_v1  ;;  %v2445_v0 = vld [vmem:[%s2901_s1 + $0xc0] sm:$0xff]  }
  0x39   : > { %2221 = vmatprep.subr.bf16.mxu0 %v2424_v2 }
  0x3b   : > { %2126 = vmatpush3.bf16.msra.mxu1 %v2423_v1  ;;  %v2446_v1 = vld [vmem:[%s2901_s1 + $0x1c0] sm:$0xff]  }
  0x3c   : > { %2222 = vmatpush3.bf16.msra.mxu0 %v2424_v2  ;;  %2127 = vmatprep.subr.bf16.mxu1 %v2425_v4  ;;  %v2447_v2 = vld [vmem:[%s2901_s1 + $0xc8] sm:$0xff]  }
  0x3d   : > { %2223 = vmatprep.subr.bf16.mxu0 %v2426_v5 }
  0x3f   : > { %2128 = vmatpush3.bf16.msra.mxu1 %v2425_v4  ;;  %v1891_v4 = vld [vmem:[%s2548_s17 + $0x90] sm:$0xff] }
  0x40   : > { %2224 = vmatpush3.bf16.msra.mxu0 %v2426_v5  ;;  %2129 = vmatprep.subr.bf16.mxu1 %v2427_v13  ;;  %v2448_v5 = vld [vmem:[%s2901_s1 + $0x1c8] sm:$0xff]   ;;  %v1143_v7 = vmax.f32 %v1891_v4, 0.0 }
  0x41   : > { %2225 = vmatprep.subr.bf16.mxu0 %v2428_v14 }
  0x42   : > { %v1147_v12 = vpack.c.bf16 %v1143_v7, %v1142_v6  ;;  %v2477_v7 = vmov (!%p1980_p5), 0.0  }
  0x43   : > { %2130 = vmatpush3.bf16.msra.mxu1 %v2427_v13  ;;  %v2451_v13 = vld [vmem:[%s2901_s1 + $0xd8] sm:$0xff]   ;;  %1614 = vst [vmem:[%s2903_s3] sm:$0x1] (!%p1980_p5), %v2477_v7  ;;  %1615 = vst [vmem:[%s2904_s4] sm:$0x1] (!%p1980_p5), %v2477_v7 }
  0x44   : > { %2226 = vmatpush3.bf16.msra.mxu0 %v2428_v14  ;;  %2139 = vmatprep.subr.bf16.mxu1 %v2429_v23  ;;  %v2452_v14 = vld [vmem:[%s2901_s1 + $0x1d8] sm:$0xff]  }
  0x45   : > { %2235 = vmatprep.subr.bf16.mxu0 %v2430_v24 }
  0x46   : > { %2132 = vmatmul.mubr.bf16.vlgmr.msra.gmra.mrb[0].mxu1 %v212_v27 }
  0x47   : > { %2140 = vmatpush3.bf16.msra.mxu1 %v2429_v23  ;;  %2228 = vmatmul.mubr.bf16.vlgmr.msra.gmra.mrb[0].mxu0 %v986_v30  ;;  %v2454_v23 = vld [vmem:[%s2901_s1 + $0x1e0] sm:$0xff]   ;;  %v2462_v30 = vld [vmem:[%s2901_s1 + $0x208] sm:$0xff]  }
  0x48   : > { %2236 = vmatpush3.bf16.msra.mxu0 %v2430_v24  ;;  %2141 = vmatprep.subr.bf16.mxu1 %v2431_v28  ;;  %v2460_v24 = vld [vmem:[%s2901_s1 + $0x1f8] sm:$0xff]  }
  0x49   : > { %2237 = vmatprep.subr.bf16.mxu0 %v2432_v34  ;;  %2135 = vmatprep.mubr.bf16.mxu1 %v2712_v35 }
  0x4a   : > { %2231 = vmatprep.mubr.bf16.mxu0 %v987_v37 }
  0x4b   : > { %2142 = vmatpush3.bf16.msra.mxu1 %v2431_v28  ;;  %v670_v28 = vpack.c.bf16 %v207_v25, %v206_v20  ;;  %v672_v20 = vpack.c.bf16 %v1142_v6, %v210_v39 }
  0x4c   : > { %2238 = vmatpush3.bf16.msra.mxu0 %v2432_v34  ;;  %2143 = vmatprep.subr.bf16.mxu1 %v2433_v44  ;;  %v1923_v34 = vld [vmem:[%s2548_s17 + $0x91] sm:$0xff] }
  0x4d   : > { %2239 = vmatprep.subr.bf16.mxu0 %v2434_v46  ;;  %v1301_v11 = vmax.f32 %v1923_v34, 0.0 }
  0x4e   : > { %2136 = vmatmul.mubr.bf16.gmra.mrb[4].mxu1 %v214_v48 }
  0x4f   : > { %2144 = vmatpush3.bf16.msra.mxu1 %v2433_v44  ;;  %2232 = vmatmul.mubr.bf16.gmra.mrb[4].mxu0 %v988_v51 }
  0x50   : > { %2240 = vmatpush3.bf16.msra.mxu0 %v2434_v46  ;;  %2145 = vmatprep.subr.bf16.mxu1 %v2435_v54 }
  0x51   : > { %2241 = vmatprep.subr.bf16.mxu0 %v2436_v55  ;;  %2155 = vmatprep.mubr.bf16.mxu1 %v510_v56 }
  0x52   : > { %2251 = vmatprep.mubr.bf16.mxu0 %v212_v27  ;;  %v2461_v27 = vld [vmem:[%s2901_s1 + $0x200] sm:$0xff]  }
  0x53   : > { %2146 = vmatpush3.bf16.msra.mxu1 %v2435_v54 }
  0x54   : > { %2242 = vmatpush3.bf16.msra.mxu0 %v2436_v55  ;;  %2147 = vmatprep.subr.bf16.mxu1 %v2437_v57 }
  0x55   : > { %2243 = vmatprep.subr.bf16.mxu0 %v2438_v58 }
  0x57   : > { %2148 = vmatpush3.bf16.msra.mxu1 %v2437_v57 }
  0x58   : > { %2244 = vmatpush3.bf16.msra.mxu0 %v2438_v58  ;;  %2149 = vmatprep.subr.bf16.mxu1 %v2439_v50 }
  0x59   : > { %2245 = vmatprep.subr.bf16.mxu0 %v2440_v53 }
  0x5b   : > { %2150 = vmatpush3.bf16.msra.mxu1 %v2439_v50 }
  0x5c   : > { %2246 = vmatpush3.bf16.msra.mxu0 %v2440_v53  ;;  %2151 = vmatprep.subr.bf16.mxu1 %v2441_v59 }
  0x5d   : > { %2247 = vmatprep.subr.bf16.mxu0 %v2442_v60 }
  0x5f   : > { %2152 = vmatpush3.bf16.msra.mxu1 %v2441_v59 }
  0x60   : > { %2248 = vmatpush3.bf16.msra.mxu0 %v2442_v60  ;;  %2153 = vmatprep.subr.bf16.mxu1 %v2443_v61 }
  0x61   : > { %2249 = vmatprep.subr.bf16.mxu0 %v2444_v63 }
  0x63   : > { %2154 = vmatpush3.bf16.msra.mxu1 %v2443_v61 }
  0x64   : > { %2250 = vmatpush3.bf16.msra.mxu0 %v2444_v63  ;;  %2163 = vmatprep.subr.bf16.mxu1 %v2445_v0 }
  0x65   : > { %2259 = vmatprep.subr.bf16.mxu0 %v2446_v1 }
  0x66   : > { %2156 = vmatmul.mubr.bf16.vlgmr.msra.gmra.mrb[0].mxu1 %v2633_v62 }
  0x67   : > { %2164 = vmatpush3.bf16.msra.mxu1 %v2445_v0  ;;  %2252 = vmatmul.mubr.bf16.vlgmr.msra.gmra.mrb[0].mxu0 %v2712_v35  ;;  %v671_v35 = vpack.c.bf16 %v209_v36, %v208_v26 }
  0x68   : > { %2260 = vmatpush3.bf16.msra.mxu0 %v2446_v1  ;;  %2165 = vmatprep.subr.bf16.mxu1 %v2447_v2 }
  0x69   : > { %2261 = vmatprep.subr.bf16.mxu0 %v2448_v5  ;;  %2159 = vmatprep.mubr.bf16.mxu1 %v2669_v17 }
  0x6a   : > { %2255 = vmatprep.mubr.bf16.mxu0 %v214_v48 }
  0x6b   : > { %2166 = vmatpush3.bf16.msra.mxu1 %v2447_v2 }
  0x6c   : > { %2262 = vmatpush3.bf16.msra.mxu0 %v2448_v5  ;;  %2167 = vmatprep.subr.bf16.mxu1 %v2449_v9 }
  0x6d   : > { %2263 = vmatprep.subr.bf16.mxu0 %v2450_v10 }
  0x6e   : > { %2160 = vmatmul.mubr.bf16.gmra.mrb[4].mxu1 %v2679_v22 }
  0x6f   : > { %2168 = vmatpush3.bf16.msra.mxu1 %v2449_v9  ;;  %2256 = vmatmul.mubr.bf16.gmra.mrb[4].mxu0 %v1147_v12 }
  0x70   : > { %2264 = vmatpush3.bf16.msra.mxu0 %v2450_v10  ;;  %2169 = vmatprep.subr.bf16.mxu1 %v2451_v13 }
  0x71   : > { %2265 = vmatprep.subr.bf16.mxu0 %v2452_v14  ;;  %2179 = vmatprep.mubr.bf16.mxu1 %v669_v15 }
  0x72   : > { %2275 = vmatprep.mubr.bf16.mxu0 %v2580_v31  ;;  %v2458_v31 = vld [vmem:[%s2901_s1 + $0x1f0] sm:$0xff]  }
  0x73   : > { %2170 = vmatpush3.bf16.msra.mxu1 %v2451_v13 }
  0x74   : > { %2266 = vmatpush3.bf16.msra.mxu0 %v2452_v14  ;;  %2171 = vmatprep.subr.bf16.mxu1 %v2453_v16 }
  0x75   : > { %2267 = vmatprep.subr.bf16.mxu0 %v2454_v23 }
  0x77   : > { %2172 = vmatpush3.bf16.msra.mxu1 %v2453_v16 }
  0x78   : > { %2268 = vmatpush3.bf16.msra.mxu0 %v2454_v23  ;;  %2173 = vmatprep.subr.bf16.mxu1 %v2455_v45 }
  0x79   : > { %2269 = vmatprep.subr.bf16.mxu0 %v2456_v49 }
  0x7b   : > { %2174 = vmatpush3.bf16.msra.mxu1 %v2455_v45 }
  0x7c   : > { %2270 = vmatpush3.bf16.msra.mxu0 %v2456_v49  ;;  %2175 = vmatprep.subr.bf16.mxu1 %v2457_v8 }
  0x7d   : > { %2271 = vmatprep.subr.bf16.mxu0 %v2458_v31 }
  0x7f   : > { %2176 = vmatpush3.bf16.msra.mxu1 %v2457_v8 }
  0x80   : > { %2272 = vmatpush3.bf16.msra.mxu0 %v2458_v31  ;;  %2177 = vmatprep.subr.bf16.mxu1 %v2459_v18 }
  0x81   : > { %2273 = vmatprep.subr.bf16.mxu0 %v2460_v24 }
  0x83   : > { %2178 = vmatpush3.bf16.msra.mxu1 %v2459_v18 }
  0x84   : > { %2274 = vmatpush3.bf16.msra.mxu0 %v2460_v24  ;;  %2307 = vmatprep.subr.bf16.mxu1 %v2461_v27 }
  0x85   : > { %2283 = vmatprep.subr.bf16.mxu0 %v2461_v27 }
  0x86   : > { %2180 = vmatmul.mubr.bf16.vlgmr.msra.gmra.mrb[0].mxu1 %v670_v28 }
  0x87   : > { %2276 = vmatmul.mubr.bf16.vlgmr.msra.gmra.mrb[0].mxu0 %v2593_v40  ;;  %2315 = vmatpush3.bf16.msra.mxu1 %v2461_v27  ;;  %v1305_v40 = vpack.c.bf16 %v1301_v11, %v826_v43  ;;  %v2467_v43 = vld [vmem:[%s2901_s1 + $0x230] sm:$0xff]  }
  0x88   : > { %2284 = vmatpush3.bf16.msra.mxu0 %v2461_v27  ;;  %2308 = vmatprep.subr.bf16.mxu1 %v2462_v30 }
  0x89   : > { %2285 = vmatprep.subr.bf16.mxu0 %v2462_v30  ;;  %2183 = vmatprep.mubr.bf16.mxu1 %v671_v35 }
  0x8a   : > { %2279 = vmatprep.mubr.bf16.mxu0 %v2613_v52  ;;  %v2465_v52 = vld [vmem:[%s2901_s1 + $0x220] sm:$0xff]  }
  0x8b   : > { %2316 = vmatpush3.bf16.msra.mxu1 %v2462_v30 }
  0x8c   : > { %2286 = vmatpush3.bf16.msra.mxu0 %v2462_v30  ;;  %2309 = vmatprep.subr.bf16.mxu1 %v2463_v19 }
  0x8d   : > { %2287 = vmatprep.subr.bf16.mxu0 %v2463_v19 }
  0x8e   : > { %2184 = vmatmul.mubr.bf16.gmra.mrb[4].mxu1 %v672_v20 }
  0x8f   : > { %2280 = vmatmul.mubr.bf16.gmra.mrb[4].mxu0 %v1305_v40  ;;  %2317 = vmatpush3.bf16.msra.mxu1 %v2463_v19 }
  0x90   : > { %2288 = vmatpush3.bf16.msra.mxu0 %v2463_v19  ;;  %2310 = vmatprep.subr.bf16.mxu1 %v2464_v21 }
  0x91   : > { %2289 = vmatprep.subr.bf16.mxu0 %v2464_v21  ;;  %2299 = vmatprep.mubr.bf16.mxu0 %v2633_v62  ;;  %v1955_v62 = vld [vmem:[%s2548_s17 + $0x92] sm:$0xff]  ;;  %s1730_s17 = sshll.u32 %s2509_s16, 3 }
  0x92   : > { %2303 = vmatprep.mubr.bf16.mxu1 %v2679_v22  ;;  %v2468_v22 = vld [vmem:[%s2901_s1 + $0x238] sm:$0xff]   ;;  %v1459_v25 = vmax.f32 %v1955_v62, 0.0  ;;  %p189_p4 = scmp.lt.s32.totalorder %s1730_s17, 15 }
  0x93   : > { %2318 = vmatpush3.bf16.msra.mxu1 %v2464_v21 }
  0x94   : > { %2290 = vmatpush3.bf16.msra.mxu0 %v2464_v21  ;;  %2311 = vmatprep.subr.bf16.mxu1 %v2465_v52  ;;  %v1463_v26 = vpack.c.bf16 %v1459_v25, %v984_v42  ;;  %s2906_s17 = smov (!%p189_p4, %s1730_s17), 15 }
  0x95   : > { %2291 = vmatprep.subr.bf16.mxu0 %v2465_v52  ;;  %s1731_s27 = sshll.u32 %s2906_s17, 3 }
  0x96   : > { %s192_s30 = scalar_lea.vmem %s2902_s2, %s1731_s27 }
  0x97   : > { %2319 = vmatpush3.bf16.msra.mxu1 %v2465_v52 }
  0x98   : > { %2292 = vmatpush3.bf16.msra.mxu0 %v2465_v52  ;;  %2312 = vmatprep.subr.bf16.mxu1 %v2466_v38 }
  0x99   : > { %2293 = vmatprep.subr.bf16.mxu0 %v2466_v38 }
  0x9b   : > { %2320 = vmatpush3.bf16.msra.mxu1 %v2466_v38 }
  0x9c   : > { %2294 = vmatpush3.bf16.msra.mxu0 %v2466_v38  ;;  %2313 = vmatprep.subr.bf16.mxu1 %v2467_v43 }
  0x9d   : > { %2295 = vmatprep.subr.bf16.mxu0 %v2467_v43 }
  0x9f   : > { %2321 = vmatpush3.bf16.msra.mxu1 %v2467_v43 }
  0xa0   : > { %2296 = vmatpush3.bf16.msra.mxu0 %v2467_v43  ;;  %2314 = vmatprep.subr.bf16.mxu1 %v2468_v22 }
  0xa1   : > { %2297 = vmatprep.subr.bf16.mxu0 %v2468_v22 }
  0xa3   : > { %2322 = vmatpush3.bf16.msra.mxu1 %v2468_v22 }
  0xa4   : > { %2298 = vmatpush3.bf16.msra.mxu0 %v2468_v22 }
  0xa6   : > { %2304 = vmatmul.mubr.bf16.vlgmr.msra.gmra.mrb[8].mxu1 %v1463_v26 }
  0xa7   : > { %2300 = vmatmul.mubr.bf16.vlgmr.msra.gmra.mrb[0].mxu0 %v2669_v17 }
 0x159   : > { %v2181_v29 = vpop.f32.mrb[0].mxu1 }
 0x15a   : > { %v772_v32 = vpop.f32.mrb[1].mxu1 }
 0x15b   : > { %v2182_v36 = vpop.f32.mrb[2].mxu1 }
 0x15c   : > { %v775_v37 = vpop.f32.mrb[3].mxu1 }
 0x161   : > { %v2185_v39 = vpop.f32.mrb[4].mxu1 }
 0x162   : > { %v2281_v41 = vpop.f32.mrb[4].mxu0  ;;  %v788_v44 = vpop.f32.mrb[5].mxu1 }
 0x163   : > { %v2327_v46 = vadd.f32 %v2281_v41, %v2185_v39  ;;  %v1421_v47 = vpop.f32.mrb[5].mxu0  ;;  %v2186_v48 = vpop.f32.mrb[6].mxu1 }
 0x164   : > { %v2329_v51 = vadd.f32 %v1421_v47, %v788_v44  ;;  %v2282_v54 = vpop.f32.mrb[6].mxu0  ;;  %v791_v33 = vpop.f32.mrb[7].mxu1 }
 0x165   : > { %v2331_v42 = vadd.f32 %v2282_v54, %v2186_v48  ;;  %v1424_v55 = vpop.f32.mrb[7].mxu0 }
 0x166   : > { %v2333_v56 = vadd.f32 %v1424_v55, %v791_v33 }
 0x179   : > { %v2305_v17 = vpop.f32.mrb[8].mxu1 }
 0x17a   : > { %v2301_v57 = vpop.f32.mrb[0].mxu0  ;;  %v2328_v58 = vadd.f32 %v2327_v46, %v2305_v17  ;;  %v1579_v50 = vpop.f32.mrb[9].mxu1  ;;  %1613 = sbr.rel (%p1980_p5) target bundleno = 385 (0x181), region = 32 }
 0x17b   : > { %v2323_v53 = vadd.f32 %v2301_v57, %v2181_v29  ;;  %v1563_v59 = vpop.f32.mrb[1].mxu0  ;;  %v2330_v60 = vadd.f32 %v2329_v51, %v1579_v50  ;;  %v2306_v61 = vpop.f32.mrb[10].mxu1 }
 0x17c   : > { %1608 = vst [vmem:[%s192_s30 + $0x30] sm:$0xff] %v2328_v58  ;;  %v2324_v63 = vadd.f32 %v1563_v59, %v772_v32  ;;  %v2302_v0 = vpop.f32.mrb[2].mxu0  ;;  %v2332_v1 = vadd.f32 %v2331_v42, %v2306_v61  ;;  %v1582_v2 = vpop.f32.mrb[11].mxu1 }
 0x17d   : > { %1604 = vst [vmem:[%s192_s30 + $0x10] sm:$0xff] %v2323_v53  ;;  %1606 = vst [vmem:[%s192_s30 + $0x20] sm:$0xff] %v2330_v60  ;;  %v2325_v3 = vadd.f32 %v2302_v0, %v2182_v36  ;;  %v1566_v4 = vpop.f32.mrb[3].mxu0  ;;  %v2334_v5 = vadd.f32 %v2333_v56, %v1582_v2 }
 0x17e   : > { %1602 = vst [vmem:[%s192_s30] sm:$0xff] %v2324_v63  ;;  %1609 = vst [vmem:[%s192_s30 + $0x38] sm:$0xff] %v2332_v1  ;;  %v2326_v6 = vadd.f32 %v1566_v4, %v775_v37 }
 0x17f   : > { %1605 = vst [vmem:[%s192_s30 + $0x18] sm:$0xff] %v2325_v3  ;;  %1607 = vst [vmem:[%s192_s30 + $0x28] sm:$0xff] %v2334_v5 }
 0x180   : > { %1603 = vst [vmem:[%s192_s30 + $0x8] sm:$0xff] %v2326_v6 }
 0x181 PF: > { %v1617_v9 = vadd.f32 %v2326_v6, %v2324_v63  ;;  %v1633_v10 = vmul.f32 %v2324_v63, %v2324_v63  ;;  %v1634_v12 = vmul.f32 %v2326_v6, %v2326_v6  ;;  %v1635_v13 = vmul.f32 %v2323_v53, %v2323_v53  ;;  %v1616_v29 = vld [vmem:[%s2903_s3] sm:$0x1] }
 0x182   : > { %v1636_v15 = vmul.f32 %v2325_v3, %v2325_v3  ;;  %v1637_v45 = vmul.f32 %v2330_v60, %v2330_v60  ;;  %v1638_v31 = vmul.f32 %v2334_v5, %v2334_v5  ;;  %v1639_v27 = vmul.f32 %v2328_v58, %v2328_v58  ;;  %v1632_v37 = vld [vmem:[%s2904_s4] sm:$0x1] }
 0x183   : > { %v1618_v14 = vadd.f32 %v2323_v53, %v1617_v9  ;;  %v1641_v16 = vadd.f32 %v1634_v12, %v1633_v10  ;;  %v1640_v34 = vmul.f32 %v2332_v1, %v2332_v1 }
 0x185   : > { %v1619_v23 = vadd.f32 %v2325_v3, %v1618_v14  ;;  %v1642_v49 = vadd.f32 %v1641_v16, %v1635_v13 }
 0x187   : > { %v1620_v8 = vadd.f32 %v2330_v60, %v1619_v23  ;;  %v1643_v18 = vadd.f32 %v1642_v49, %v1636_v15 }
 0x189   : > { %v1621_v24 = vadd.f32 %v2334_v5, %v1620_v8  ;;  %v1644_v28 = vadd.f32 %v1643_v18, %v1637_v45 }
 0x18b   : > { %v1622_v30 = vadd.f32 %v2328_v58, %v1621_v24  ;;  %v1645_v35 = vadd.f32 %v1644_v28, %v1638_v31 }
 0x18d   : > { %v1623_v11 = vadd.f32 %v2332_v1, %v1622_v30  ;;  %v1646_v19 = vadd.f32 %v1645_v35, %v1639_v27 }
 0x18f   : > { %v1624_v20 = vrot.slane %v1623_v11, 4  ;;  %v1647_v40 = vadd.f32 %v1646_v19, %v1640_v34 }
 0x191   : > { %v1625_v21 = vadd.f32 %v1624_v20, %v1623_v11  ;;  %v1648_v52 = vrot.slane %v1647_v40, 4 }
 0x193   : > { %v1626_v38 = vrot.slane %v1625_v21, 2  ;;  %v1649_v43 = vadd.f32 %v1648_v52, %v1647_v40 }
 0x195   : > { %v1627_v62 = vadd.f32 %v1626_v38, %v1625_v21  ;;  %v1650_v22 = vrot.slane %v1649_v43, 2 }
 0x197   : > { %v1628_v25 = vrot.slane %v1627_v62, 1  ;;  %v1651_v26 = vadd.f32 %v1650_v22, %v1649_v43 }
 0x199   : > { %v1629_v32 = vadd.f32 %v1628_v25, %v1627_v62  ;;  %v1652_v36 = vrot.slane %v1651_v26, 1 }
 0x19b   : > { %v1630_v39 = vadd.f32 %v1629_v32, %v1616_v29  ;;  %v1653_v41 = vadd.f32 %v1652_v36, %v1651_v26 }
 0x19d   : > { %1631 = vst [vmem:[%s2903_s3] sm:$0x1] %v1630_v39  ;;  %v1654_v44 = vadd.f32 %v1653_v41, %v1632_v37 }
 0x19f   : > { %1655 = vst [vmem:[%s2904_s4] sm:$0x1] %v1654_v44 }
 0x1a0 PF: > { %s15_s15 = sadd.s32 1, %s2475_s15  }
 0x1a1   : > { %p12_p6 = scmp.ge.s32.totalorder %s15_s15, 4  }
 0x1a3   :  { %14 = sbr.rel (!%p12_p6) target bundleno = 1 (0x1), region = 88 }

</bundles_post_ra>
